<compile_context>
chip_gen: v7x
topology: tpu7x:2x2x1
jax: 0.10.0
libtpu: 0.0.40
codegen_flags: <defaults>
</compile_context>

<pallas_src>
import functools

import jax
import jax.numpy as jnp
from jax import lax
from jax.experimental import pallas as pl
from jax.experimental.pallas import tpu as pltpu


# ---------------------------------------------------------------------------
# Prologue: embedding-row gather (nn.Embedding lookup), hoisted out of the
# vocab-tile grid so the expand grid can be fully 'parallel'.
# ---------------------------------------------------------------------------
def _gather_kernel(idx_ref, emb_hbm_ref, hidden_ref, sem_ref):
    # idx_ref:     (B,)   int32, SMEM (scalar prefetch)
    # emb_hbm_ref: (V, E) f32,   HBM (pl.ANY) -- manual row DMAs only
    # hidden_ref:  (B, E) f32,   VMEM output block (whole array)
    # sem_ref:     (B,)   DMA semaphores
    B = hidden_ref.shape[0]
    copies = []
    # All idx_ref scalar reads are issued before any .wait()
    # (avoids the SMEM sst->sld forwarding break around DMA waits).
    for b in range(B):  # B is small and static -> fully unrolled
        cp = pltpu.make_async_copy(
            emb_hbm_ref.at[pl.ds(idx_ref[b], 1), :],
            hidden_ref.at[pl.ds(b, 1), :],
            sem_ref.at[b],
        )
        cp.start()
        copies.append(cp)
    for cp in copies:
        cp.wait()


def _gather_rows(idx_i32, emb_weight):
    B = idx_i32.shape[0]
    V, E = emb_weight.shape
    itemsize = jnp.dtype(emb_weight.dtype).itemsize
    return pl.pallas_call(
        _gather_kernel,
        out_shape=jax.ShapeDtypeStruct((B, E), emb_weight.dtype),
        grid_spec=pltpu.PrefetchScalarGridSpec(
            num_scalar_prefetch=1,                       # idx -> SMEM
            grid=(1,),
            in_specs=[pl.BlockSpec(memory_space=pl.ANY)],  # embedding table in HBM
            out_specs=pl.BlockSpec((B, E), lambda i, idx_ref: (0, 0)),
            scratch_shapes=[pltpu.SemaphoreType.DMA((B,))],
        ),
        compiler_params=pltpu.CompilerParams(
            dimension_semantics=("arbitrary",),
        ),
        cost_estimate=pl.CostEstimate(
            flops=0,
            transcendentals=0,
            bytes_accessed=2 * B * E * itemsize + B * 4,
        ),
    )(idx_i32, emb_weight)


# ---------------------------------------------------------------------------
# Expand: logits tile = hidden @ W_tile.T (contract on E, no materialized
# transpose of the weight tile), streamed over vocab tiles.
# ---------------------------------------------------------------------------
def _expand_kernel(hidden_ref, w_ref, out_ref):
    # hidden_ref: (B, E)  f32 (resident across all vocab tiles)
    # w_ref:      (tv, E) f32 or bf16 (streamed)
    # out_ref:    (B, tv) f32
    h = hidden_ref[...].astype(w_ref.dtype)   # no-op for f32; bf16 MXU path otherwise
    out_ref[...] = lax.dot_general(
        h,
        w_ref[...],
        dimension_numbers=(((1,), (1,)), ((), ())),
        preferred_element_type=jnp.float32,
    )


def _pick_vocab_tile(V, tv_req):
    """Largest multiple-of-128 divisor of V that is <= tv_req (fallback: V)."""
    tv_req = min(tv_req, V)
    best = V
    for c in range(128, tv_req + 1, 128):
        if V % c == 0:
            best = c
    return best


@functools.partial(jax.jit, static_argnames=("tv", "weight_dtype"))
def word2vec_forward(idx, emb_weight, expand_weight, *, tv=4096, weight_dtype=None):
    """Word2Vec forward.

    idx:           (B,)   integer token indices in [0, V)
    emb_weight:    (V, E) float32  (nn.Embedding.weight)
    expand_weight: (V, E) float32  (nn.Linear(E, V, bias=False).weight)
    tv:            vocab tile size (multiple of 128; auto-adjusted to divide V)
    weight_dtype:  optional streaming dtype for the expand weight
                   (e.g. jnp.bfloat16 halves HBM traffic; accumulation stays f32)
    returns:       (B, V) float32 logits
    """
    B = idx.shape[0]
    V, E = emb_weight.shape
    assert expand_weight.shape == (V, E)
    tv = _pick_vocab_tile(V, tv)

    idx_i32 = idx.astype(jnp.int32)

    # 1) Embedding lookup (tiny Pallas prologue; keeps the expand grid stateless).
    hidden = _gather_rows(idx_i32, emb_weight)                     # (B, E) f32

    # 2) Expand matmul, tiled over the vocab dimension.
    w = expand_weight if weight_dtype is None else expand_weight.astype(weight_dtype)
    w_itemsize = jnp.dtype(w.dtype).itemsize

    buf_bytes = (2 * tv * E * w_itemsize        # double-buffered weight tile
                 + 2 * B * tv * 4               # double-buffered output tile
                 + 2 * B * E * 4)               # resident hidden block
    # Cap well under v7x's 64 MiB physical VMEM; floor above v5e's 16 MiB default.
    vmem_limit = int(min(48 << 20, max(buf_bytes + (8 << 20), 16 << 20)))

    cost = pl.CostEstimate(
        flops=2 * B * V * E,
        bytes_accessed=V * E * w_itemsize + B * E * 4 + B * V * 4,
        transcendentals=0,
    )

    return pl.pallas_call(
        _expand_kernel,
        out_shape=jax.ShapeDtypeStruct((B, V), jnp.float32),
        grid_spec=pltpu.PrefetchScalarGridSpec(
            num_scalar_prefetch=0,
            grid=(V // tv,),
            in_specs=[
                pl.BlockSpec((B, E), lambda j: (0, 0)),    # hidden: resident
                pl.BlockSpec((tv, E), lambda j: (j, 0)),   # weight tile: streamed
            ],
            out_specs=pl.BlockSpec((B, tv), lambda j: (0, j)),
        ),
        compiler_params=pltpu.CompilerParams(
            # Stateless per-tile work -> safe to shard across v7x's 2 TCs.
            dimension_semantics=("parallel",),
            vmem_limit_bytes=vmem_limit,
        ),
        cost_estimate=cost,
    )(hidden, w)


if __name__ == "__main__":
    # Small, deterministic synthetic setup (matches nn.Embedding/nn.Linear shapes).
    vocab_size = 8192
    embedding_size = 128
    batch = 8

    key = jax.random.PRNGKey(0)
    k_emb, k_exp, k_idx = jax.random.split(key, 3)

    emb_weight = jax.random.normal(
        k_emb, (vocab_size, embedding_size), dtype=jnp.float32)
    expand_weight = (
        jax.random.normal(k_exp, (vocab_size, embedding_size), dtype=jnp.float32)
        * (1.0 / jnp.sqrt(embedding_size)))

    idx = jax.random.randint(k_idx, (batch,), 0, vocab_size, dtype=jnp.int32)

    # f32 path (PyTorch-faithful numerics).
    logits = jax.block_until_ready(word2vec_forward(idx, emb_weight, expand_weight))

    # Pure-JAX reference: gather + matmul (PyTorch forward semantics).
    hidden_ref = jnp.take(emb_weight, idx, axis=0)
    logits_ref = hidden_ref @ expand_weight.T
    assert logits.shape == (batch, vocab_size)
    assert logits.dtype == jnp.float32
    assert jnp.allclose(logits, logits_ref, atol=1e-4, rtol=1e-3)

    # bf16-streamed expand weight (biggest HBM-bandwidth lever; documented
    # deviation from strict f32 numerics -> compare against a bf16 reference).
    logits_bf16 = jax.block_until_ready(
        word2vec_forward(idx, emb_weight, expand_weight, weight_dtype=jnp.bfloat16))
    ref_bf16 = lax.dot_general(
        hidden_ref.astype(jnp.bfloat16),
        expand_weight.astype(jnp.bfloat16),
        dimension_numbers=(((1,), (1,)), ((), ())),
        preferred_element_type=jnp.float32)
    assert logits_bf16.shape == (batch, vocab_size)
    assert jnp.allclose(logits_bf16, ref_bf16, atol=5e-2, rtol=5e-2)

    print("KERNEL_OK")
</pallas_src>

<mosaic_0001>
module attributes {stable_mosaic.version = 11 : i64} {
  func.func @_expand_kernel(%arg0: i32, %arg1: memref<8x128xf32, #tpu.memory_space<vmem>>, %arg2: memref<4096x128xf32, #tpu.memory_space<vmem>>, %arg3: memref<8x4096xf32, #tpu.memory_space<vmem>>) attributes {dimension_semantics = [#tpu.dimension_semantics<parallel>], iteration_bounds = array<i64: 2>, scalar_prefetch = 0 : i64, scratch_operands = 0 : i64, tpu.core_type = #tpu.core_type<tc>, window_params = [{pipeline_mode = #tpu.pipeline_mode<synchronous>, transform_indices = @transform_0, window_bounds = array<i64: 8, 128>}, {transform_indices = @transform_1, window_bounds = array<i64: 4096, 128>}, {transform_indices = @transform_2, window_bounds = array<i64: 8, 4096>}]} {
    %c0 = arith.constant 0 : index
    %c0_0 = arith.constant 0 : index
    %0 = vector.load %arg1[%c0, %c0_0] : memref<8x128xf32, #tpu.memory_space<vmem>>, vector<8x128xf32>
    %c0_1 = arith.constant 0 : index
    %c0_2 = arith.constant 0 : index
    %1 = vector.load %arg2[%c0_1, %c0_2] : memref<4096x128xf32, #tpu.memory_space<vmem>>, vector<4096x128xf32>
    %cst = arith.constant dense<0.000000e+00> : vector<8x4096xf32>
    %2 = tpu.matmul %0, %1, %cst {dimension_numbers = #tpu.dot_dimension_numbers<[1], [1], [0], [0], [0, 0, 1, 0], [], []>} : vector<8x128xf32>, vector<4096x128xf32>, vector<8x4096xf32> -> vector<8x4096xf32>
    %c0_3 = arith.constant 0 : index
    %c0_4 = arith.constant 0 : index
    %3 = vector.load %arg3[%c0_3, %c0_4] : memref<8x4096xf32, #tpu.memory_space<vmem>>, vector<8x4096xf32>
    tpu.vector_store %arg3[%c0_3, %c0_4], %2 {strides = array<i32>} : memref<8x4096xf32, #tpu.memory_space<vmem>>, vector<8x4096xf32>,
    return
  }
  func.func @transform_0(%arg0: i32) -> (i32, i32) {
    %c0_i32 = arith.constant 0 : i32
    %c0_i32_0 = arith.constant 0 : i32
    %c0_i32_1 = arith.constant 0 : i32
    return %c0_i32, %c0_i32_0 : i32, i32
  }
  func.func @transform_1(%arg0: i32) -> (i32, i32) {
    %c0_i32 = arith.constant 0 : i32
    %c0_i32_0 = arith.constant 0 : i32
    return %arg0, %c0_i32 : i32, i32
  }
  func.func @transform_2(%arg0: i32) -> (i32, i32) {
    %c0_i32 = arith.constant 0 : i32
    %c0_i32_0 = arith.constant 0 : i32
    return %c0_i32, %arg0 : i32, i32
  }
}

module attributes {stable_mosaic.version = 11 : i64} {
  func.func @_gather_kernel(%arg0: i32, %arg1: memref<8xi32, #tpu.memory_space<smem>>, %arg2: memref<8192x128xf32, #tpu.memory_space<any>>, %arg3: memref<8x128xf32, #tpu.memory_space<vmem>>, %arg4: memref<8x!tpu.dma_semaphore, #tpu.memory_space<semaphore_mem>>) attributes {dimension_semantics = [#tpu.dimension_semantics<arbitrary>], iteration_bounds = array<i64: 1>, scalar_prefetch = 1 : i64, scratch_operands = 1 : i64, tpu.core_type = #tpu.core_type<tc>, window_params = [{}, {pipeline_mode = #tpu.pipeline_mode<synchronous>, transform_indices = @transform_1, window_bounds = array<i64: 8, 128>}]} {
    %c0 = arith.constant 0 : index
    %0 = memref.load %arg1[%c0] : memref<8xi32, #tpu.memory_space<smem>>
    %c0_i32 = arith.constant 0 : i32
    %c0_i32_0 = arith.constant 0 : i32
    %1 = tpu.memref_slice %arg2[%0, %c0_i32_0] : memref<8192x128xf32, #tpu.memory_space<any>> -> memref<1x128xf32, #tpu.memory_space<any>>
    %c0_i32_1 = arith.constant 0 : i32
    %c0_i32_2 = arith.constant 0 : i32
    %2 = tpu.memref_slice %arg3[%c0_i32_1, %c0_i32_2] : memref<8x128xf32, #tpu.memory_space<vmem>> -> memref<1x128xf32, #tpu.memory_space<vmem>>
    %3 = tpu.memref_slice %arg4[%c0_i32] : memref<8x!tpu.dma_semaphore, #tpu.memory_space<semaphore_mem>> -> memref<1x!tpu.dma_semaphore, #tpu.memory_space<semaphore_mem>>
    %4 = tpu.memref_squeeze %3 : memref<1x!tpu.dma_semaphore, #tpu.memory_space<semaphore_mem>> -> memref<!tpu.dma_semaphore, #tpu.memory_space<semaphore_mem>>
    tpu.enqueue_dma source(%1 : memref<1x128xf32, #tpu.memory_space<any>>) target(%2 : memref<1x128xf32, #tpu.memory_space<vmem>>) target_semaphore(%4 : memref<!tpu.dma_semaphore, #tpu.memory_space<semaphore_mem>>)
    %c1 = arith.constant 1 : index
    %5 = memref.load %arg1[%c1] : memref<8xi32, #tpu.memory_space<smem>>
    %c1_i32 = arith.constant 1 : i32
    %c0_i32_3 = arith.constant 0 : i32
    %6 = tpu.memref_slice %arg2[%5, %c0_i32_3] : memref<8192x128xf32, #tpu.memory_space<any>> -> memref<1x128xf32, #tpu.memory_space<any>>
    %c1_i32_4 = arith.constant 1 : i32
    %c0_i32_5 = arith.constant 0 : i32
    %7 = tpu.memref_slice %arg3[%c1_i32_4, %c0_i32_5] : memref<8x128xf32, #tpu.memory_space<vmem>> -> memref<1x128xf32, #tpu.memory_space<vmem>>
    %8 = tpu.memref_slice %arg4[%c1_i32] : memref<8x!tpu.dma_semaphore, #tpu.memory_space<semaphore_mem>> -> memref<1x!tpu.dma_semaphore, #tpu.memory_space<semaphore_mem>>
    %9 = tpu.memref_squeeze %8 : memref<1x!tpu.dma_semaphore, #tpu.memory_space<semaphore_mem>> -> memref<!tpu.dma_semaphore, #tpu.memory_space<semaphore_mem>>
    tpu.enqueue_dma source(%6 : memref<1x128xf32, #tpu.memory_space<any>>) target(%7 : memref<1x128xf32, #tpu.memory_space<vmem>>) target_semaphore(%9 : memref<!tpu.dma_semaphore, #tpu.memory_space<semaphore_mem>>)
    %c2 = arith.constant 2 : index
    %10 = memref.load %arg1[%c2] : memref<8xi32, #tpu.memory_space<smem>>
    %c2_i32 = arith.constant 2 : i32
    %c0_i32_6 = arith.constant 0 : i32
    %11 = tpu.memref_slice %arg2[%10, %c0_i32_6] : memref<8192x128xf32, #tpu.memory_space<any>> -> memref<1x128xf32, #tpu.memory_space<any>>
    %c2_i32_7 = arith.constant 2 : i32
    %c0_i32_8 = arith.constant 0 : i32
    %12 = tpu.memref_slice %arg3[%c2_i32_7, %c0_i32_8] : memref<8x128xf32, #tpu.memory_space<vmem>> -> memref<1x128xf32, #tpu.memory_space<vmem>>
    %13 = tpu.memref_slice %arg4[%c2_i32] : memref<8x!tpu.dma_semaphore, #tpu.memory_space<semaphore_mem>> -> memref<1x!tpu.dma_semaphore, #tpu.memory_space<semaphore_mem>>
    %14 = tpu.memref_squeeze %13 : memref<1x!tpu.dma_semaphore, #tpu.memory_space<semaphore_mem>> -> memref<!tpu.dma_semaphore, #tpu.memory_space<semaphore_mem>>
    tpu.enqueue_dma source(%11 : memref<1x128xf32, #tpu.memory_space<any>>) target(%12 : memref<1x128xf32, #tpu.memory_space<vmem>>) target_semaphore(%14 : memref<!tpu.dma_semaphore, #tpu.memory_space<semaphore_mem>>)
    %c3 = arith.constant 3 : index
    %15 = memref.load %arg1[%c3] : memref<8xi32, #tpu.memory_space<smem>>
    %c3_i32 = arith.constant 3 : i32
    %c0_i32_9 = arith.constant 0 : i32
    %16 = tpu.memref_slice %arg2[%15, %c0_i32_9] : memref<8192x128xf32, #tpu.memory_space<any>> -> memref<1x128xf32, #tpu.memory_space<any>>
    %c3_i32_10 = arith.constant 3 : i32
    %c0_i32_11 = arith.constant 0 : i32
    %17 = tpu.memref_slice %arg3[%c3_i32_10, %c0_i32_11] : memref<8x128xf32, #tpu.memory_space<vmem>> -> memref<1x128xf32, #tpu.memory_space<vmem>>
    %18 = tpu.memref_slice %arg4[%c3_i32] : memref<8x!tpu.dma_semaphore, #tpu.memory_space<semaphore_mem>> -> memref<1x!tpu.dma_semaphore, #tpu.memory_space<semaphore_mem>>
    %19 = tpu.memref_squeeze %18 : memref<1x!tpu.dma_semaphore, #tpu.memory_space<semaphore_mem>> -> memref<!tpu.dma_semaphore, #tpu.memory_space<semaphore_mem>>
    tpu.enqueue_dma source(%16 : memref<1x128xf32, #tpu.memory_space<any>>) target(%17 : memref<1x128xf32, #tpu.memory_space<vmem>>) target_semaphore(%19 : memref<!tpu.dma_semaphore, #tpu.memory_space<semaphore_mem>>)
    %c4 = arith.constant 4 : index
    %20 = memref.load %arg1[%c4] : memref<8xi32, #tpu.memory_space<smem>>
    %c4_i32 = arith.constant 4 : i32
    %c0_i32_12 = arith.constant 0 : i32
    %21 = tpu.memref_slice %arg2[%20, %c0_i32_12] : memref<8192x128xf32, #tpu.memory_space<any>> -> memref<1x128xf32, #tpu.memory_space<any>>
    %c4_i32_13 = arith.constant 4 : i32
    %c0_i32_14 = arith.constant 0 : i32
    %22 = tpu.memref_slice %arg3[%c4_i32_13, %c0_i32_14] : memref<8x128xf32, #tpu.memory_space<vmem>> -> memref<1x128xf32, #tpu.memory_space<vmem>>
    %23 = tpu.memref_slice %arg4[%c4_i32] : memref<8x!tpu.dma_semaphore, #tpu.memory_space<semaphore_mem>> -> memref<1x!tpu.dma_semaphore, #tpu.memory_space<semaphore_mem>>
    %24 = tpu.memref_squeeze %23 : memref<1x!tpu.dma_semaphore, #tpu.memory_space<semaphore_mem>> -> memref<!tpu.dma_semaphore, #tpu.memory_space<semaphore_mem>>
    tpu.enqueue_dma source(%21 : memref<1x128xf32, #tpu.memory_space<any>>) target(%22 : memref<1x128xf32, #tpu.memory_space<vmem>>) target_semaphore(%24 : memref<!tpu.dma_semaphore, #tpu.memory_space<semaphore_mem>>)
    %c5 = arith.constant 5 : index
    %25 = memref.load %arg1[%c5] : memref<8xi32, #tpu.memory_space<smem>>
    %c5_i32 = arith.constant 5 : i32
    %c0_i32_15 = arith.constant 0 : i32
    %26 = tpu.memref_slice %arg2[%25, %c0_i32_15] : memref<8192x128xf32, #tpu.memory_space<any>> -> memref<1x128xf32, #tpu.memory_space<any>>
    %c5_i32_16 = arith.constant 5 : i32
    %c0_i32_17 = arith.constant 0 : i32
    %27 = tpu.memref_slice %arg3[%c5_i32_16, %c0_i32_17] : memref<8x128xf32, #tpu.memory_space<vmem>> -> memref<1x128xf32, #tpu.memory_space<vmem>>
    %28 = tpu.memref_slice %arg4[%c5_i32] : memref<8x!tpu.dma_semaphore, #tpu.memory_space<semaphore_mem>> -> memref<1x!tpu.dma_semaphore, #tpu.memory_space<semaphore_mem>>
    %29 = tpu.memref_squeeze %28 : memref<1x!tpu.dma_semaphore, #tpu.memory_space<semaphore_mem>> -> memref<!tpu.dma_semaphore, #tpu.memory_space<semaphore_mem>>
    tpu.enqueue_dma source(%26 : memref<1x128xf32, #tpu.memory_space<any>>) target(%27 : memref<1x128xf32, #tpu.memory_space<vmem>>) target_semaphore(%29 : memref<!tpu.dma_semaphore, #tpu.memory_space<semaphore_mem>>)
    %c6 = arith.constant 6 : index
    %30 = memref.load %arg1[%c6] : memref<8xi32, #tpu.memory_space<smem>>
    %c6_i32 = arith.constant 6 : i32
    %c0_i32_18 = arith.constant 0 : i32
    %31 = tpu.memref_slice %arg2[%30, %c0_i32_18] : memref<8192x128xf32, #tpu.memory_space<any>> -> memref<1x128xf32, #tpu.memory_space<any>>
    %c6_i32_19 = arith.constant 6 : i32
    %c0_i32_20 = arith.constant 0 : i32
    %32 = tpu.memref_slice %arg3[%c6_i32_19, %c0_i32_20] : memref<8x128xf32, #tpu.memory_space<vmem>> -> memref<1x128xf32, #tpu.memory_space<vmem>>
    %33 = tpu.memref_slice %arg4[%c6_i32] : memref<8x!tpu.dma_semaphore, #tpu.memory_space<semaphore_mem>> -> memref<1x!tpu.dma_semaphore, #tpu.memory_space<semaphore_mem>>
    %34 = tpu.memref_squeeze %33 : memref<1x!tpu.dma_semaphore, #tpu.memory_space<semaphore_mem>> -> memref<!tpu.dma_semaphore, #tpu.memory_space<semaphore_mem>>
    tpu.enqueue_dma source(%31 : memref<1x128xf32, #tpu.memory_space<any>>) target(%32 : memref<1x128xf32, #tpu.memory_space<vmem>>) target_semaphore(%34 : memref<!tpu.dma_semaphore, #tpu.memory_space<semaphore_mem>>)
    %c7 = arith.constant 7 : index
    %35 = memref.load %arg1[%c7] : memref<8xi32, #tpu.memory_space<smem>>
    %c7_i32 = arith.constant 7 : i32
    %c0_i32_21 = arith.constant 0 : i32
    %36 = tpu.memref_slice %arg2[%35, %c0_i32_21] : memref<8192x128xf32, #tpu.memory_space<any>> -> memref<1x128xf32, #tpu.memory_space<any>>
    %c7_i32_22 = arith.constant 7 : i32
    %c0_i32_23 = arith.constant 0 : i32
    %37 = tpu.memref_slice %arg3[%c7_i32_22, %c0_i32_23] : memref<8x128xf32, #tpu.memory_space<vmem>> -> memref<1x128xf32, #tpu.memory_space<vmem>>
    %38 = tpu.memref_slice %arg4[%c7_i32] : memref<8x!tpu.dma_semaphore, #tpu.memory_space<semaphore_mem>> -> memref<1x!tpu.dma_semaphore, #tpu.memory_space<semaphore_mem>>
    %39 = tpu.memref_squeeze %38 : memref<1x!tpu.dma_semaphore, #tpu.memory_space<semaphore_mem>> -> memref<!tpu.dma_semaphore, #tpu.memory_space<semaphore_mem>>
    tpu.enqueue_dma source(%36 : memref<1x128xf32, #tpu.memory_space<any>>) target(%37 : memref<1x128xf32, #tpu.memory_space<vmem>>) target_semaphore(%39 : memref<!tpu.dma_semaphore, #tpu.memory_space<semaphore_mem>>)
    %c0_i32_24 = arith.constant 0 : i32
    %c0_i32_25 = arith.constant 0 : i32
    %40 = tpu.memref_slice %arg2[%0, %c0_i32_25] : memref<8192x128xf32, #tpu.memory_space<any>> -> memref<1x128xf32, #tpu.memory_space<any>>
    %c0_i32_26 = arith.constant 0 : i32
    %c0_i32_27 = arith.constant 0 : i32
    %41 = tpu.memref_slice %arg3[%c0_i32_26, %c0_i32_27] : memref<8x128xf32, #tpu.memory_space<vmem>> -> memref<1x128xf32, #tpu.memory_space<vmem>>
    %42 = tpu.memref_slice %arg4[%c0_i32_24] : memref<8x!tpu.dma_semaphore, #tpu.memory_space<semaphore_mem>> -> memref<1x!tpu.dma_semaphore, #tpu.memory_space<semaphore_mem>>
    %43 = tpu.memref_squeeze %42 : memref<1x!tpu.dma_semaphore, #tpu.memory_space<semaphore_mem>> -> memref<!tpu.dma_semaphore, #tpu.memory_space<semaphore_mem>>
    tpu.wait_dma2 semaphore(%43 : memref<!tpu.dma_semaphore, #tpu.memory_space<semaphore_mem>>) src(%40 : memref<1x128xf32, #tpu.memory_space<any>>) dst(%41 : memref<1x128xf32, #tpu.memory_space<vmem>>)
    %c1_i32_28 = arith.constant 1 : i32
    %c0_i32_29 = arith.constant 0 : i32
    %44 = tpu.memref_slice %arg2[%5, %c0_i32_29] : memref<8192x128xf32, #tpu.memory_space<any>> -> memref<1x128xf32, #tpu.memory_space<any>>
    %c1_i32_30 = arith.constant 1 : i32
    %c0_i32_31 = arith.constant 0 : i32
    %45 = tpu.memref_slice %arg3[%c1_i32_30, %c0_i32_31] : memref<8x128xf32, #tpu.memory_space<vmem>> -> memref<1x128xf32, #tpu.memory_space<vmem>>
    %46 = tpu.memref_slice %arg4[%c1_i32_28] : memref<8x!tpu.dma_semaphore, #tpu.memory_space<semaphore_mem>> -> memref<1x!tpu.dma_semaphore, #tpu.memory_space<semaphore_mem>>
    %47 = tpu.memref_squeeze %46 : memref<1x!tpu.dma_semaphore, #tpu.memory_space<semaphore_mem>> -> memref<!tpu.dma_semaphore, #tpu.memory_space<semaphore_mem>>
    tpu.wait_dma2 semaphore(%47 : memref<!tpu.dma_semaphore, #tpu.memory_space<semaphore_mem>>) src(%44 : memref<1x128xf32, #tpu.memory_space<any>>) dst(%45 : memref<1x128xf32, #tpu.memory_space<vmem>>)
    %c2_i32_32 = arith.constant 2 : i32
    %c0_i32_33 = arith.constant 0 : i32
    %48 = tpu.memref_slice %arg2[%10, %c0_i32_33] : memref<8192x128xf32, #tpu.memory_space<any>> -> memref<1x128xf32, #tpu.memory_space<any>>
    %c2_i32_34 = arith.constant 2 : i32
    %c0_i32_35 = arith.constant 0 : i32
    %49 = tpu.memref_slice %arg3[%c2_i32_34, %c0_i32_35] : memref<8x128xf32, #tpu.memory_space<vmem>> -> memref<1x128xf32, #tpu.memory_space<vmem>>
    %50 = tpu.memref_slice %arg4[%c2_i32_32] : memref<8x!tpu.dma_semaphore, #tpu.memory_space<semaphore_mem>> -> memref<1x!tpu.dma_semaphore, #tpu.memory_space<semaphore_mem>>
    %51 = tpu.memref_squeeze %50 : memref<1x!tpu.dma_semaphore, #tpu.memory_space<semaphore_mem>> -> memref<!tpu.dma_semaphore, #tpu.memory_space<semaphore_mem>>
    tpu.wait_dma2 semaphore(%51 : memref<!tpu.dma_semaphore, #tpu.memory_space<semaphore_mem>>) src(%48 : memref<1x128xf32, #tpu.memory_space<any>>) dst(%49 : memref<1x128xf32, #tpu.memory_space<vmem>>)
    %c3_i32_36 = arith.constant 3 : i32
    %c0_i32_37 = arith.constant 0 : i32
    %52 = tpu.memref_slice %arg2[%15, %c0_i32_37] : memref<8192x128xf32, #tpu.memory_space<any>> -> memref<1x128xf32, #tpu.memory_space<any>>
    %c3_i32_38 = arith.constant 3 : i32
    %c0_i32_39 = arith.constant 0 : i32
    %53 = tpu.memref_slice %arg3[%c3_i32_38, %c0_i32_39] : memref<8x128xf32, #tpu.memory_space<vmem>> -> memref<1x128xf32, #tpu.memory_space<vmem>>
    %54 = tpu.memref_slice %arg4[%c3_i32_36] : memref<8x!tpu.dma_semaphore, #tpu.memory_space<semaphore_mem>> -> memref<1x!tpu.dma_semaphore, #tpu.memory_space<semaphore_mem>>
    %55 = tpu.memref_squeeze %54 : memref<1x!tpu.dma_semaphore, #tpu.memory_space<semaphore_mem>> -> memref<!tpu.dma_semaphore, #tpu.memory_space<semaphore_mem>>
    tpu.wait_dma2 semaphore(%55 : memref<!tpu.dma_semaphore, #tpu.memory_space<semaphore_mem>>) src(%52 : memref<1x128xf32, #tpu.memory_space<any>>) dst(%53 : memref<1x128xf32, #tpu.memory_space<vmem>>)
    %c4_i32_40 = arith.constant 4 : i32
    %c0_i32_41 = arith.constant 0 : i32
    %56 = tpu.memref_slice %arg2[%20, %c0_i32_41] : memref<8192x128xf32, #tpu.memory_space<any>> -> memref<1x128xf32, #tpu.memory_space<any>>
    %c4_i32_42 = arith.constant 4 : i32
    %c0_i32_43 = arith.constant 0 : i32
    %57 = tpu.memref_slice %arg3[%c4_i32_42, %c0_i32_43] : memref<8x128xf32, #tpu.memory_space<vmem>> -> memref<1x128xf32, #tpu.memory_space<vmem>>
    %58 = tpu.memref_slice %arg4[%c4_i32_40] : memref<8x!tpu.dma_semaphore, #tpu.memory_space<semaphore_mem>> -> memref<1x!tpu.dma_semaphore, #tpu.memory_space<semaphore_mem>>
    %59 = tpu.memref_squeeze %58 : memref<1x!tpu.dma_semaphore, #tpu.memory_space<semaphore_mem>> -> memref<!tpu.dma_semaphore, #tpu.memory_space<semaphore_mem>>
    tpu.wait_dma2 semaphore(%59 : memref<!tpu.dma_semaphore, #tpu.memory_space<semaphore_mem>>) src(%56 : memref<1x128xf32, #tpu.memory_space<any>>) dst(%57 : memref<1x128xf32, #tpu.memory_space<vmem>>)
    %c5_i32_44 = arith.constant 5 : i32
    %c0_i32_45 = arith.constant 0 : i32
    %60 = tpu.memref_slice %arg2[%25, %c0_i32_45] : memref<8192x128xf32, #tpu.memory_space<any>> -> memref<1x128xf32, #tpu.memory_space<any>>
    %c5_i32_46 = arith.constant 5 : i32
    %c0_i32_47 = arith.constant 0 : i32
    %61 = tpu.memref_slice %arg3[%c5_i32_46, %c0_i32_47] : memref<8x128xf32, #tpu.memory_space<vmem>> -> memref<1x128xf32, #tpu.memory_space<vmem>>
    %62 = tpu.memref_slice %arg4[%c5_i32_44] : memref<8x!tpu.dma_semaphore, #tpu.memory_space<semaphore_mem>> -> memref<1x!tpu.dma_semaphore, #tpu.memory_space<semaphore_mem>>
    %63 = tpu.memref_squeeze %62 : memref<1x!tpu.dma_semaphore, #tpu.memory_space<semaphore_mem>> -> memref<!tpu.dma_semaphore, #tpu.memory_space<semaphore_mem>>
    tpu.wait_dma2 semaphore(%63 : memref<!tpu.dma_semaphore, #tpu.memory_space<semaphore_mem>>) src(%60 : memref<1x128xf32, #tpu.memory_space<any>>) dst(%61 : memref<1x128xf32, #tpu.memory_space<vmem>>)
    %c6_i32_48 = arith.constant 6 : i32
    %c0_i32_49 = arith.constant 0 : i32
    %64 = tpu.memref_slice %arg2[%30, %c0_i32_49] : memref<8192x128xf32, #tpu.memory_space<any>> -> memref<1x128xf32, #tpu.memory_space<any>>
    %c6_i32_50 = arith.constant 6 : i32
    %c0_i32_51 = arith.constant 0 : i32
    %65 = tpu.memref_slice %arg3[%c6_i32_50, %c0_i32_51] : memref<8x128xf32, #tpu.memory_space<vmem>> -> memref<1x128xf32, #tpu.memory_space<vmem>>
    %66 = tpu.memref_slice %arg4[%c6_i32_48] : memref<8x!tpu.dma_semaphore, #tpu.memory_space<semaphore_mem>> -> memref<1x!tpu.dma_semaphore, #tpu.memory_space<semaphore_mem>>
    %67 = tpu.memref_squeeze %66 : memref<1x!tpu.dma_semaphore, #tpu.memory_space<semaphore_mem>> -> memref<!tpu.dma_semaphore, #tpu.memory_space<semaphore_mem>>
    tpu.wait_dma2 semaphore(%67 : memref<!tpu.dma_semaphore, #tpu.memory_space<semaphore_mem>>) src(%64 : memref<1x128xf32, #tpu.memory_space<any>>) dst(%65 : memref<1x128xf32, #tpu.memory_space<vmem>>)
    %c7_i32_52 = arith.constant 7 : i32
    %c0_i32_53 = arith.constant 0 : i32
    %68 = tpu.memref_slice %arg2[%35, %c0_i32_53] : memref<8192x128xf32, #tpu.memory_space<any>> -> memref<1x128xf32, #tpu.memory_space<any>>
    %c7_i32_54 = arith.constant 7 : i32
    %c0_i32_55 = arith.constant 0 : i32
    %69 = tpu.memref_slice %arg3[%c7_i32_54, %c0_i32_55] : memref<8x128xf32, #tpu.memory_space<vmem>> -> memref<1x128xf32, #tpu.memory_space<vmem>>
    %70 = tpu.memref_slice %arg4[%c7_i32_52] : memref<8x!tpu.dma_semaphore, #tpu.memory_space<semaphore_mem>> -> memref<1x!tpu.dma_semaphore, #tpu.memory_space<semaphore_mem>>
    %71 = tpu.memref_squeeze %70 : memref<1x!tpu.dma_semaphore, #tpu.memory_space<semaphore_mem>> -> memref<!tpu.dma_semaphore, #tpu.memory_space<semaphore_mem>>
    tpu.wait_dma2 semaphore(%71 : memref<!tpu.dma_semaphore, #tpu.memory_space<semaphore_mem>>) src(%68 : memref<1x128xf32, #tpu.memory_space<any>>) dst(%69 : memref<1x128xf32, #tpu.memory_space<vmem>>)
    return
  }
  func.func @transform_1(%arg0: i32, %arg1: memref<8xi32, #tpu.memory_space<smem>>) -> (i32, i32) {
    %c0_i32 = arith.constant 0 : i32
    %c0_i32_0 = arith.constant 0 : i32
    %c0_i32_1 = arith.constant 0 : i32
    return %c0_i32, %c0_i32_0 : i32, i32
  }
}

</mosaic_0001>

<bundles_post_ra>
// kernel: word2vec_forward.2
= control target key start
LH: loop header
LB: loop body
LE: loop exit
PB: predicated region body
PF: predicated region fallthrough
CT: control target
= control target key end

     0   :  { %s660_s0 = inlined_call_operand.hbm [shape: s32[8], index: 0, kind: input, shape index: {}]   ;;  %s661_s1 = inlined_call_operand.hbm [shape: f32[8192,128], index: 1, kind: input, shape index: {}]   ;;  %s662_s2 = inlined_call_operand.vmem [shape: f32[8,128], index: 2, kind: output, shape index: {}]  }
   0x1   :  { %s253_s11 = scalar_lea.hbm %s660_s0, 16 }
   0x2   :  { %p254_p0 = scmp.ne.s32.totalorder %s660_s0, %s253_s11  ;;  %p257_p1 = scmp.lt.u32.totalorder %s253_s11, %s660_s0 }
   0x4   :  { %p259_p2 = pnand %p257_p1, %p254_p0 }
   0x6   :  { %262 = shalt.err (!%p259_p2)  }
   0x7   :  { %s473_s16 = smov [#allocation4]  }
   0x8   :  { %8 = dma.hbm_to_smem %s660_s0, 16, %s473_s16, [#allocation3] }
   0x9   :  { %455 = dma.done.wait [#allocation3], 16 }
   0xa   :  { %456 = vsyncadd [#allocation3], 4294967280 }
   0xb   :  { %10 = sfence }
   0xc   :  { %s11_s19 = sld [smem:[#allocation4]]  ;;  %s21_s22 = sshll.u32 %s662_s2, 4  ;;  %s504_s22 = int_to_ptr.vmem [resolvable:$true] %s21_s22 }
   0xd   :  { %s506_s23 = sld [smem:[#allocation4 + $0x1]]  ;;  %s28_s26 = scalar_lea.vmem %s662_s2, 1 }
   0xe   :  { %s511_s27 = sld [smem:[#allocation4 + $0x2]]  ;;  %s37_s0 = sshll.u32 %s28_s26, 4  ;;  %s516_s0 = int_to_ptr.vmem [resolvable:$true] %s37_s0 }
   0xf   :  { %s44_s30 = scalar_lea.vmem %s662_s2, 2  ;;  %s520_s4 = sld [smem:[#allocation4 + $0x3]] }
  0x10   :  { %s53_s3 = sshll.u32 %s44_s30, 4  ;;  %s60_s8 = scalar_lea.vmem %s662_s2, 3  ;;  %s518_s3 = int_to_ptr.vmem [resolvable:$true] %s53_s3 }
  0x11   :  { %s532_s16 = scalar_lea.hbm %s661_s1, 131072 }
  0x12   :  { %s229_s5 = sshll.u32 %s11_s19, 4 }
  0x13   :  { %s13_s11 = scalar_lea.hbm %s661_s1, %s229_s5  ;;  %s231_s12 = sshll.u32 %s506_s23, 4 }
  0x14   :  { %s263_s13 = scalar_lea.hbm %s13_s11, 16  ;;  %p266_p4 = scmp.lt.u32.totalorder %s13_s11, %s661_s1 }
  0x15   :  { %p264_p3 = scmp.ne.s32.totalorder %s13_s11, %s263_s13  ;;  %p267_p5 = scmp.lt.u32.totalorder %s532_s16, %s263_s13 }
  0x16   :  { %p269_p7 = scmp.lt.u32.totalorder %s263_s13, %s13_s11 }
  0x17   :  { %p268_p6 = por %p267_p5, %p266_p4 }
  0x19   :  { %p270_p8 = por %p269_p7, %p268_p6 }
  0x1b   :  { %p271_p9 = pnand %p270_p8, %p264_p3 }
  0x1d   :  { %274 = shalt.err (!%p271_p9)  }
  0x1e   :  { %s275_s19 = scalar_lea.vmem %s504_s22, 16  ;;  %s541_s20 = scalar_lea.vmem %s504_s22, 128 }
  0x1f   :  { %p276_p10 = scmp.ne.s32.totalorder %s504_s22, %s275_s19  ;;  %p280_p11 = scmp.lt.s32.totalorder %s504_s22, %s504_s22 }
  0x20   :  { %p281_p12 = scmp.lt.s32.totalorder %s541_s20, %s275_s19 }
  0x22   :  { %p282_p13 = por %p281_p12, %p280_p11 }
  0x24   :  { %p283_p0 = pnand %p282_p13, %p276_p10 }
  0x26   :  { %286 = shalt.err (!%p283_p0)  }
  0x27   :  { %24 = dma.hbm_to_vmem [thread:$0]  %s13_s11, 16, %s504_s22, [#allocation2] }
  0x28   :  { %s27_s24 = scalar_lea.hbm %s661_s1, %s231_s12  ;;  %s233_s25 = sshll.u32 %s511_s27, 4 }
  0x29   :  { %s287_s26 = scalar_lea.hbm %s27_s24, 16  ;;  %p290_p2 = scmp.lt.u32.totalorder %s27_s24, %s661_s1 }
  0x2a   :  { %p288_p1 = scmp.ne.s32.totalorder %s27_s24, %s287_s26  ;;  %p291_p3 = scmp.lt.u32.totalorder %s532_s16, %s287_s26 }
  0x2b   :  { %p293_p5 = scmp.lt.u32.totalorder %s287_s26, %s27_s24 }
  0x2c   :  { %p292_p4 = por %p291_p3, %p290_p2 }
  0x2e   :  { %p294_p6 = por %p293_p5, %p292_p4 }
  0x30   :  { %p295_p7 = pnand %p294_p6, %p288_p1 }
  0x32   :  { %298 = shalt.err (!%p295_p7)  }
  0x33   :  { %s299_s30 = scalar_lea.vmem %s516_s0, 16  ;;  %p304_p9 = scmp.lt.s32.totalorder %s516_s0, %s504_s22 }
  0x34   :  { %p300_p8 = scmp.ne.s32.totalorder %s516_s0, %s299_s30  ;;  %p305_p10 = scmp.lt.s32.totalorder %s541_s20, %s299_s30 }
  0x36   :  { %p306_p11 = por %p305_p10, %p304_p9 }
  0x38   :  { %p307_p12 = pnand %p306_p11, %p300_p8 }
  0x3a   :  { %310 = shalt.err (!%p307_p12)  }
  0x3b   :  { %40 = dma.hbm_to_vmem [thread:$0]  %s27_s24, 16, %s516_s0, [#allocation2 + $0x1] }
  0x3c   :  { %s43_s6 = scalar_lea.hbm %s661_s1, %s233_s25  ;;  %s235_s7 = sshll.u32 %s520_s4, 4 }
  0x3d   :  { %s311_s9 = scalar_lea.hbm %s43_s6, 16  ;;  %p314_p0 = scmp.lt.u32.totalorder %s43_s6, %s661_s1 }
  0x3e   :  { %p312_p13 = scmp.ne.s32.totalorder %s43_s6, %s311_s9  ;;  %p315_p1 = scmp.lt.u32.totalorder %s532_s16, %s311_s9 }
  0x3f   :  { %p317_p3 = scmp.lt.u32.totalorder %s311_s9, %s43_s6 }
  0x40   :  { %p316_p2 = por %p315_p1, %p314_p0 }
  0x42   :  { %p318_p4 = por %p317_p3, %p316_p2 }
  0x44   :  { %p319_p5 = pnand %p318_p4, %p312_p13 }
  0x46   :  { %322 = shalt.err (!%p319_p5)  }
  0x47   :  { %s323_s0 = scalar_lea.vmem %s518_s3, 16  ;;  %p328_p7 = scmp.lt.s32.totalorder %s518_s3, %s504_s22 }
  0x48   :  { %p324_p6 = scmp.ne.s32.totalorder %s518_s3, %s323_s0  ;;  %p329_p8 = scmp.lt.s32.totalorder %s541_s20, %s323_s0 }
  0x4a   :  { %p330_p9 = por %p329_p8, %p328_p7 }
  0x4c   :  { %p331_p10 = pnand %p330_p9, %p324_p6 }
  0x4e   :  { %334 = shalt.err (!%p331_p10)  }
  0x4f   :  { %56 = dma.hbm_to_vmem [thread:$0]  %s43_s6, 16, %s518_s3, [#allocation2 + $0x2] }
  0x50   :  { %s59_s13 = scalar_lea.hbm %s661_s1, %s235_s7  ;;  %s69_s17 = sshll.u32 %s60_s8, 4  ;;  %s70_s17 = int_to_ptr.vmem [resolvable:$true] %s69_s17 }
  0x51   :  { %s582_s18 = sld [smem:[#allocation4 + $0x4]]  ;;  %s335_s19 = scalar_lea.hbm %s59_s13, 16 }
  0x52   :  { %p336_p11 = scmp.ne.s32.totalorder %s59_s13, %s335_s19  ;;  %p338_p12 = scmp.lt.u32.totalorder %s59_s13, %s661_s1 }
  0x53   :  { %p339_p13 = scmp.lt.u32.totalorder %s532_s16, %s335_s19  ;;  %p341_p1 = scmp.lt.u32.totalorder %s335_s19, %s59_s13 }
  0x55   :  { %p340_p0 = por %p339_p13, %p338_p12 }
  0x57   :  { %p342_p2 = por %p341_p1, %p340_p0 }
  0x59   :  { %p343_p3 = pnand %p342_p2, %p336_p11 }
  0x5b   :  { %346 = shalt.err (!%p343_p3)  }
  0x5c   :  { %s347_s3 = scalar_lea.vmem %s70_s17, 16  ;;  %p352_p5 = scmp.lt.s32.totalorder %s70_s17, %s504_s22 }
  0x5d   :  { %p348_p4 = scmp.ne.s32.totalorder %s70_s17, %s347_s3  ;;  %p353_p6 = scmp.lt.s32.totalorder %s541_s20, %s347_s3 }
  0x5f   :  { %p354_p7 = por %p353_p6, %p352_p5 }
  0x61   :  { %p355_p8 = pnand %p354_p7, %p348_p4 }
  0x63   :  { %358 = shalt.err (!%p355_p8)  }
  0x64   :  { %72 = dma.hbm_to_vmem [thread:$0]  %s59_s13, 16, %s70_s17, [#allocation2 + $0x3] }
  0x65   :  { %s76_s25 = scalar_lea.vmem %s662_s2, 4  ;;  %s593_s26 = sld [smem:[#allocation4 + $0x5]] }
  0x66   :  { %s85_s28 = sshll.u32 %s76_s25, 4  ;;  %s92_s27 = scalar_lea.vmem %s662_s2, 5  ;;  %s86_s28 = int_to_ptr.vmem [resolvable:$true] %s85_s28 }
  0x67   :  { %s101_s5 = sshll.u32 %s92_s27, 4  ;;  %s600_s6 = sld [smem:[#allocation4 + $0x6]]  ;;  %s598_s5 = int_to_ptr.vmem [resolvable:$true] %s101_s5 }
  0x68   :  { %s237_s7 = sshll.u32 %s582_s18, 4  ;;  %s108_s11 = scalar_lea.vmem %s662_s2, 6 }
  0x69   :  { %s75_s12 = scalar_lea.hbm %s661_s1, %s237_s7  ;;  %s117_s13 = sshll.u32 %s108_s11, 4  ;;  %s616_s13 = int_to_ptr.vmem [resolvable:$true] %s117_s13 }
  0x6a   :  { %s359_s14 = scalar_lea.hbm %s75_s12, 16  ;;  %p362_p10 = scmp.lt.u32.totalorder %s75_s12, %s661_s1 }
  0x6b   :  { %p360_p9 = scmp.ne.s32.totalorder %s75_s12, %s359_s14  ;;  %p363_p11 = scmp.lt.u32.totalorder %s532_s16, %s359_s14 }
  0x6c   :  { %p365_p13 = scmp.lt.u32.totalorder %s359_s14, %s75_s12 }
  0x6d   :  { %p364_p12 = por %p363_p11, %p362_p10 }
  0x6f   :  { %p366_p0 = por %p365_p13, %p364_p12 }
  0x71   :  { %p367_p1 = pnand %p366_p0, %p360_p9 }
  0x73   :  { %370 = shalt.err (!%p367_p1)  }
  0x74   :  { %s371_s18 = scalar_lea.vmem %s86_s28, 16  ;;  %p376_p3 = scmp.lt.s32.totalorder %s86_s28, %s504_s22 }
  0x75   :  { %p372_p2 = scmp.ne.s32.totalorder %s86_s28, %s371_s18  ;;  %p377_p4 = scmp.lt.s32.totalorder %s541_s20, %s371_s18 }
  0x77   :  { %p378_p5 = por %p377_p4, %p376_p3 }
  0x79   :  { %p379_p6 = pnand %p378_p5, %p372_p2 }
  0x7b   :  { %382 = shalt.err (!%p379_p6)  }
  0x7c   :  { %88 = dma.hbm_to_vmem [thread:$0]  %s75_s12, 16, %s86_s28, [#allocation2 + $0x4] }
  0x7d   :  { %s239_s19 = sshll.u32 %s593_s26, 4  ;;  %s621_s8 = sld [smem:[#allocation4 + $0x7]] }
  0x7e   :  { %s91_s3 = scalar_lea.hbm %s661_s1, %s239_s19 }
  0x7f   :  { %s383_s24 = scalar_lea.hbm %s91_s3, 16  ;;  %p386_p8 = scmp.lt.u32.totalorder %s91_s3, %s661_s1 }
  0x80   :  { %p384_p7 = scmp.ne.s32.totalorder %s91_s3, %s383_s24  ;;  %p387_p9 = scmp.lt.u32.totalorder %s532_s16, %s383_s24 }
  0x81   :  { %p389_p11 = scmp.lt.u32.totalorder %s383_s24, %s91_s3 }
  0x82   :  { %p388_p10 = por %p387_p9, %p386_p8 }
  0x84   :  { %p390_p12 = por %p389_p11, %p388_p10 }
  0x86   :  { %p391_p13 = pnand %p390_p12, %p384_p7 }
  0x88   :  { %394 = shalt.err (!%p391_p13)  }
  0x89   :  { %s395_s26 = scalar_lea.vmem %s598_s5, 16  ;;  %p400_p1 = scmp.lt.s32.totalorder %s598_s5, %s504_s22 }
  0x8a   :  { %p396_p0 = scmp.ne.s32.totalorder %s598_s5, %s395_s26  ;;  %p401_p2 = scmp.lt.s32.totalorder %s541_s20, %s395_s26 }
  0x8c   :  { %p402_p3 = por %p401_p2, %p400_p1 }
  0x8e   :  { %p403_p4 = pnand %p402_p3, %p396_p0 }
  0x90   :  { %406 = shalt.err (!%p403_p4)  }
  0x91   :  { %104 = dma.hbm_to_vmem [thread:$0]  %s91_s3, 16, %s598_s5, [#allocation2 + $0x5] }
  0x92   :  { %s241_s28 = sshll.u32 %s600_s6, 4  ;;  %s124_s7 = scalar_lea.vmem %s662_s2, 7 }
  0x93   :  { %s107_s11 = scalar_lea.hbm %s661_s1, %s241_s28  ;;  %s133_s0 = sshll.u32 %s124_s7, 4  ;;  %s134_s0 = int_to_ptr.vmem [resolvable:$true] %s133_s0 }
  0x94   :  { %s407_s4 = scalar_lea.hbm %s107_s11, 16  ;;  %p410_p6 = scmp.lt.u32.totalorder %s107_s11, %s661_s1 }
  0x95   :  { %p408_p5 = scmp.ne.s32.totalorder %s107_s11, %s407_s4  ;;  %p411_p7 = scmp.lt.u32.totalorder %s532_s16, %s407_s4 }
  0x96   :  { %p413_p9 = scmp.lt.u32.totalorder %s407_s4, %s107_s11 }
  0x97   :  { %p412_p8 = por %p411_p7, %p410_p6 }
  0x99   :  { %p414_p10 = por %p413_p9, %p412_p8 }
  0x9b   :  { %p415_p11 = pnand %p414_p10, %p408_p5 }
  0x9d   :  { %418 = shalt.err (!%p415_p11)  }
  0x9e   :  { %s419_s2 = scalar_lea.vmem %s616_s13, 16  ;;  %p424_p13 = scmp.lt.s32.totalorder %s616_s13, %s504_s22 }
  0x9f   :  { %p420_p12 = scmp.ne.s32.totalorder %s616_s13, %s419_s2  ;;  %p425_p0 = scmp.lt.s32.totalorder %s541_s20, %s419_s2 }
  0xa1   :  { %p426_p1 = por %p425_p0, %p424_p13 }
  0xa3   :  { %p427_p2 = pnand %p426_p1, %p420_p12 }
  0xa5   :  { %430 = shalt.err (!%p427_p2)  }
  0xa6   :  { %120 = dma.hbm_to_vmem [thread:$0]  %s107_s11, 16, %s616_s13, [#allocation2 + $0x6] }
  0xa7   :  { %s243_s5 = sshll.u32 %s621_s8, 4 }
  0xa8   :  { %s123_s17 = scalar_lea.hbm %s661_s1, %s243_s5 }
  0xa9   :  { %s431_s18 = scalar_lea.hbm %s123_s17, 16  ;;  %p434_p4 = scmp.lt.u32.totalorder %s123_s17, %s661_s1 }
  0xaa   :  { %p432_p3 = scmp.ne.s32.totalorder %s123_s17, %s431_s18  ;;  %p435_p5 = scmp.lt.u32.totalorder %s532_s16, %s431_s18 }
  0xab   :  { %p437_p7 = scmp.lt.u32.totalorder %s431_s18, %s123_s17 }
  0xac   :  { %p436_p6 = por %p435_p5, %p434_p4 }
  0xae   :  { %p438_p8 = por %p437_p7, %p436_p6 }
  0xb0   :  { %p439_p9 = pnand %p438_p8, %p432_p3 }
  0xb2   :  { %442 = shalt.err (!%p439_p9)  }
  0xb3   :  { %s443_s23 = scalar_lea.vmem %s134_s0, 16  ;;  %p448_p11 = scmp.lt.s32.totalorder %s134_s0, %s504_s22 }
  0xb4   :  { %p444_p10 = scmp.ne.s32.totalorder %s134_s0, %s443_s23  ;;  %p449_p12 = scmp.lt.s32.totalorder %s541_s20, %s443_s23 }
  0xb6   :  { %p450_p13 = por %p449_p12, %p448_p11 }
  0xb8   :  { %p451_p0 = pnand %p450_p13, %p444_p10 }
  0xba   :  { %454 = shalt.err (!%p451_p0)  }
  0xbb   :  { %136 = dma.hbm_to_vmem [thread:$0]  %s123_s17, 16, %s134_s0, [#allocation2 + $0x7] }
  0xbc   :  { %457 = dma.done.wait [#allocation2], 16 }
  0xbd   :  { %458 = vsyncadd [#allocation2], 4294967280 }
  0xbe   :  { %459 = dma.done.wait [#allocation2 + $0x1], 16 }
  0xbf   :  { %460 = vsyncadd [#allocation2 + $0x1], 4294967280 }
  0xc0   :  { %461 = dma.done.wait [#allocation2 + $0x2], 16 }
  0xc1   :  { %462 = vsyncadd [#allocation2 + $0x2], 4294967280 }
  0xc2   :  { %463 = dma.done.wait [#allocation2 + $0x3], 16 }
  0xc3   :  { %464 = vsyncadd [#allocation2 + $0x3], 4294967280 }
  0xc4   :  { %465 = dma.done.wait [#allocation2 + $0x4], 16 }
  0xc5   :  { %466 = vsyncadd [#allocation2 + $0x4], 4294967280 }
  0xc6   :  { %467 = dma.done.wait [#allocation2 + $0x5], 16 }
  0xc7   :  { %468 = vsyncadd [#allocation2 + $0x5], 4294967280 }
  0xc8   :  { %469 = dma.done.wait [#allocation2 + $0x6], 16 }
  0xc9   :  { %470 = vsyncadd [#allocation2 + $0x6], 4294967280 }
  0xca   :  { %471 = dma.done.wait [#allocation2 + $0x7], 16 }
  0xcb   :  { %472 = vsyncadd [#allocation2 + $0x7], 4294967280 }
  0xcc   :  { %158 = vsyncmov [#allocation2] }
  0xcf   :  { %s159_s1 = vpop.sfrf %158 }
  0xd0   :  { %p244_p1 = scmp.ne.s32.totalorder %s159_s1, 0 }
  0xd2   :  { %163 = shalt.err (%p244_p1)  }
  0xd3   :  { %165 = vsyncmov [#allocation2 + $0x1] }
  0xd6   :  { %s166_s22 = vpop.sfrf %165 }
  0xd7   :  { %p245_p2 = scmp.ne.s32.totalorder %s166_s22, 0 }
  0xd9   :  { %170 = shalt.err (%p245_p2)  }
  0xda   :  { %172 = vsyncmov [#allocation2 + $0x2] }
  0xdd   :  { %s173_s16 = vpop.sfrf %172 }
  0xde   :  { %p246_p3 = scmp.ne.s32.totalorder %s173_s16, 0 }
  0xe0   :  { %177 = shalt.err (%p246_p3)  }
  0xe1   :  { %179 = vsyncmov [#allocation2 + $0x3] }
  0xe4   :  { %s180_s20 = vpop.sfrf %179 }
  0xe5   :  { %p247_p4 = scmp.ne.s32.totalorder %s180_s20, 0 }
  0xe7   :  { %184 = shalt.err (%p247_p4)  }
  0xe8   :  { %186 = vsyncmov [#allocation2 + $0x4] }
  0xeb   :  { %s187_s13 = vpop.sfrf %186 }
  0xec   :  { %p248_p5 = scmp.ne.s32.totalorder %s187_s13, 0 }
  0xee   :  { %191 = shalt.err (%p248_p5)  }
  0xef   :  { %193 = vsyncmov [#allocation2 + $0x5] }
  0xf2   :  { %s194_s3 = vpop.sfrf %193 }
  0xf3   :  { %p249_p6 = scmp.ne.s32.totalorder %s194_s3, 0 }
  0xf5   :  { %198 = shalt.err (%p249_p6)  }
  0xf6   :  { %200 = vsyncmov [#allocation2 + $0x6] }
  0xf9   :  { %s201_s8 = vpop.sfrf %200 }
  0xfa   :  { %p250_p7 = scmp.ne.s32.totalorder %s201_s8, 0 }
  0xfc   :  { %205 = shalt.err (%p250_p7)  }
  0xfd   :  { %207 = vsyncmov [#allocation2 + $0x7] }
 0x100   :  { %s208_s24 = vpop.sfrf %207 }
 0x101   :  { %p251_p8 = scmp.ne.s32.totalorder %s208_s24, 0 }
 0x103   :  { %212 = shalt.err (%p251_p8)  }

// kernel: word2vec_forward.3
= control target key start
LH: loop header
LB: loop body
LE: loop exit
PB: predicated region body
PF: predicated region fallthrough
CT: control target
= control target key end

     0   :  { %7 = vsyncpa [#allocation3], 0  ;;  %s3785_s0 = inlined_call_operand.vmem [shape: f32[8,128], index: 0, kind: input, shape index: {}]   ;;  %s3786_s1 = inlined_call_operand.vmem [shape: f32[8192,128], index: 1, kind: input, shape index: {}]   ;;  %s3787_s2 = inlined_call_operand.hbm [shape: f32[8,8192], index: 2, kind: output, shape index: {}]  }
   0x1   :  { %9 = vsyncpa [#allocation3 + $0x1], 0  ;;  %s3090_s9 = smov 0   ;;  %s3092_s10 = smov 0  }
   0x2   :  { %s3094_s11 = smov 0   ;;  %s3096_s12 = smov 0  }
   0x3 LB: > { %s3111_s13 = sadd.s32 4294967295, %s3072_s12   ;;  %s1900_s14 = sadd.s32 4294967294, %s3072_s12   ;;  %s3072_s12 = sphi %s3096_s12, %s3793_s12   ;;  %s3068_s11 = sphi %s3094_s11, %s3792_s11   ;;  %s3064_s10 = sphi %s3092_s10, %s3791_s10   ;;  %s3060_s9 = sphi %s3090_s9, %s3790_s9  }
   0x4   : > { %s3115_s15 = sadd.s32 1, %s3072_s12   ;;  %s69_s16 = sadd.s32 1, %s3068_s11 }
   0x5   : > { %s66_s17 = ssub.s32 %s3072_s12, %s3115_s15  ;;  %p79_p0 = scmp.ne.s32.totalorder %s3068_s11, %s3064_s10 }
   0x6   : > { %p67_p1 = scmp.eq.s32.totalorder %s66_s17, 0  ;;  %p80_p2 = scmp.eq.s32.totalorder %s3111_s13, 1 }
   0x7   : > { %p85_p3 = scmp.ne.s32.totalorder %s3064_s10, %s3060_s9  ;;  %p86_p4 = scmp.eq.s32.totalorder %s1900_s14, 1 }
   0x8   : > { %s3126_s18 = scalar_select %p67_p1, %s3068_s11, %s69_s16  }
   0x9   : > { %p3128_p5 = por %p80_p2, %p79_p0  ;;  %p3132_p6 = por %p86_p4, %p85_p3 }
   0xa   : > { %p1903_p7 = scmp.ge.s32.totalorder %s3072_s12, 1  ;;  %p116_p8 = scmp.lt.s32.totalorder %s3072_s12, 3 }
   0xc   : > { %p117_p9 = pnand %p1903_p7, %p116_p8 }
   0xd   : > { %s1905_s21 = sshll.u32 (!%p117_p9), %s3111_s13, 9  ;;  %v3142_v0 = vld [vmem:[%s3785_s0] sm:$0xff] (!%p117_p9)  ;;  %s135_s30 = sand.u32 (!%p117_p9), 1, %s3064_s10  }
   0xe   : > { %120 = sbr.rel (%p117_p9) target bundleno = 768 (0x300), region = 28  ;;  %p139_p10 = scmp.lt.s32.totalorder (!%p117_p9), %s1905_s21, 1023  ;;  %1945 = vmatprep.mubr.f32.mxu0 (!%p117_p9), %v3142_v0  ;;  %1979 = vmatprep.mubr.f32.mxu1 (!%p117_p9), %v3142_v0 }
   0xf   : > { %s1904_s3 = sshll.u32 (!%p117_p9), %s135_s30, 8  ;;  %s1912_s7 = sshll.u32 (!%p117_p9), %s3111_s13, 12 }
  0x10   : > { %s3465_s4 = scalar_lea.vmem (!%p117_p9), [#allocation2], %s1904_s3  ;;  %s3738_s17 = scalar_lea.hbm (!%p117_p9), %s3787_s2, %s1912_s7 }
  0x11   : > { %s1841_s8 = sshll.u32 (!%p117_p9), %s3465_s4, 4  ;;  %s1827_s13 = scalar_lea.sflag (!%p117_p9), [#allocation3], %s135_s30  ;;  %s3740_s8 = int_to_ptr.vmem [resolvable:$true] %s1841_s8 }
  0x12   : > { %s3074_s22 = smov (!%p117_p9), [#allocation2]  }
  0x13   : > { %s3014_s23 = sshll.u32 (!%p117_p9), %s3074_s22, 4  ;;  %s3015_s23 = int_to_ptr.vmem [resolvable:$false] %s3014_s23 }
  0x14   : > { %p3017_p0 = scmp.lt.s32.totalorder (!%p117_p9), %s3740_s8, %s3015_s23 }
  0x15   : > { %s3795_s21 = smov (!%p139_p10, %s1905_s21), 1023 }
  0x16   : > { %s1906_s24 = sshll.u32 %s3795_s21, 3  ;;  %s3010_s21 = scalar_lea.vmem %s3740_s8, 4096 }
  0x17   : > { %s3149_s27 = scalar_lea.vmem %s3786_s1, %s1906_s24  ;;  %p3011_p11 = scmp.ne.s32.totalorder %s3740_s8, %s3010_s21 }
  0x18   : > { %v162_v1 = vld [vmem:[%s3149_s27 + $0x80] sm:$0xff]  ;;  %v163_v2 = vld [vmem:[%s3149_s27 + $0x88] sm:$0xff]  ;;  %v164_v12 = vld [vmem:[%s3149_s27 + $0x90] sm:$0xff]  ;;  %s3016_s24 = scalar_lea.vmem %s3015_s23, 8192 }
  0x19   : > { %v194_v3 = vld [vmem:[%s3149_s27 + $0x180] sm:$0xff]  ;;  %v2457_v4 = vpack.c.bf16 %v163_v2, %v162_v1  ;;  %v195_v5 = vld [vmem:[%s3149_s27 + $0x188] sm:$0xff]  ;;  %v165_v14 = vld [vmem:[%s3149_s27 + $0x98] sm:$0xff]  ;;  %p3012_p12 = pnand %p3011_p11, %p3128_p5  ;;  %p3018_p1 = scmp.lt.s32.totalorder %s3016_s24, %s3010_s21 }
  0x1a   : > { %v146_v6 = vld [vmem:[%s3149_s27] sm:$0xff]  ;;  %v147_v7 = vld [vmem:[%s3149_s27 + $0x8] sm:$0xff]  ;;  %v2489_v8 = vpack.c.bf16 %v195_v5, %v194_v3  ;;  %v196_v15 = vld [vmem:[%s3149_s27 + $0x190] sm:$0xff]  ;;  %v2461_v17 = vpack.c.bf16 %v165_v14, %v164_v12 }
  0x1b   : > { %v2459_v9 = vpack.c.bf16 %v147_v7, %v146_v6  ;;  %v178_v10 = vld [vmem:[%s3149_s27 + $0x100] sm:$0xff]  ;;  %v179_v11 = vld [vmem:[%s3149_s27 + $0x108] sm:$0xff]  ;;  %2458 = vmatprep.subr.bf16.mxu0 %v2457_v4  ;;  %v197_v16 = vld [vmem:[%s3149_s27 + $0x198] sm:$0xff]  ;;  %p3013_p13 = pneg %p3012_p12  ;;  %p3019_p2 = por %p3018_p1, %p3017_p0 }
  0x1c   : > { %v2491_v13 = vpack.c.bf16 %v179_v11, %v178_v10  ;;  %2490 = vmatprep.subr.bf16.mxu1 %v2489_v8  ;;  %v2493_v18 = vpack.c.bf16 %v197_v16, %v196_v15  ;;  %v148_v19 = vld [vmem:[%s3149_s27 + $0x10] sm:$0xff]  ;;  %v149_v20 = vld [vmem:[%s3149_s27 + $0x18] sm:$0xff]  ;;  %v166_v23 = vld [vmem:[%s3149_s27 + $0xa0] sm:$0xff] }
  0x1d   : > { %2460 = vmatpush3.bf16.xpose.msra.mxu0 %v2459_v9  ;;  %v180_v21 = vld [vmem:[%s3149_s27 + $0x110] sm:$0xff]  ;;  %v181_v22 = vld [vmem:[%s3149_s27 + $0x118] sm:$0xff]  ;;  %v167_v24 = vld [vmem:[%s3149_s27 + $0xa8] sm:$0xff]  ;;  %v2463_v27 = vpack.c.bf16 %v149_v20, %v148_v19  ;;  %p3020_p3 = pnand %p3019_p2, %p3013_p13 }
  0x1e   : > { %2492 = vmatpush3.bf16.xpose.msra.mxu1 %v2491_v13  ;;  %2462 = vmatprep.subr.bf16.mxu0 %v2461_v17  ;;  %v198_v25 = vld [vmem:[%s3149_s27 + $0x1a0] sm:$0xff]  ;;  %v199_v26 = vld [vmem:[%s3149_s27 + $0x1a8] sm:$0xff]  ;;  %v2495_v28 = vpack.c.bf16 %v181_v22, %v180_v21  ;;  %v2465_v29 = vpack.c.bf16 %v167_v24, %v166_v23  ;;  %v168_v35 = vld [vmem:[%s3149_s27 + $0xb0] sm:$0xff] }
  0x1f   : > { %2494 = vmatprep.subr.bf16.mxu1 %v2493_v18  ;;  %v2497_v30 = vpack.c.bf16 %v199_v26, %v198_v25  ;;  %v150_v31 = vld [vmem:[%s3149_s27 + $0x20] sm:$0xff]  ;;  %v151_v32 = vld [vmem:[%s3149_s27 + $0x28] sm:$0xff]  ;;  %v169_v36 = vld [vmem:[%s3149_s27 + $0xb8] sm:$0xff] }
  0x20   : > { %v182_v33 = vld [vmem:[%s3149_s27 + $0x120] sm:$0xff]  ;;  %v183_v34 = vld [vmem:[%s3149_s27 + $0x128] sm:$0xff]  ;;  %v200_v37 = vld [vmem:[%s3149_s27 + $0x1b0] sm:$0xff]  ;;  %v2467_v39 = vpack.c.bf16 %v151_v32, %v150_v31  ;;  %v2469_v41 = vpack.c.bf16 %v169_v36, %v168_v35 }
  0x21   : > { %v201_v38 = vld [vmem:[%s3149_s27 + $0x1b8] sm:$0xff]  ;;  %v2499_v40 = vpack.c.bf16 %v183_v34, %v182_v33  ;;  %v152_v43 = vld [vmem:[%s3149_s27 + $0x30] sm:$0xff]  ;;  %v170_v47 = vld [vmem:[%s3149_s27 + $0xc0] sm:$0xff] }
  0x22   : > { %v2501_v42 = vpack.c.bf16 %v201_v38, %v200_v37  ;;  %v153_v44 = vld [vmem:[%s3149_s27 + $0x38] sm:$0xff]  ;;  %v184_v45 = vld [vmem:[%s3149_s27 + $0x130] sm:$0xff]  ;;  %v171_v48 = vld [vmem:[%s3149_s27 + $0xc8] sm:$0xff] }
  0x23   : > { %v185_v46 = vld [vmem:[%s3149_s27 + $0x138] sm:$0xff]  ;;  %v202_v49 = vld [vmem:[%s3149_s27 + $0x1c0] sm:$0xff]  ;;  %v203_v50 = vld [vmem:[%s3149_s27 + $0x1c8] sm:$0xff]  ;;  %v2471_v51 = vpack.c.bf16 %v153_v44, %v152_v43  ;;  %v2473_v53 = vpack.c.bf16 %v171_v48, %v170_v47 }
  0x24   : > { %v2503_v52 = vpack.c.bf16 %v185_v46, %v184_v45  ;;  %v2505_v54 = vpack.c.bf16 %v203_v50, %v202_v49  ;;  %v154_v55 = vld [vmem:[%s3149_s27 + $0x40] sm:$0xff]  ;;  %v155_v56 = vld [vmem:[%s3149_s27 + $0x48] sm:$0xff]  ;;  %v172_v59 = vld [vmem:[%s3149_s27 + $0xd0] sm:$0xff] }
  0x25   : > { %2464 = vmatpush3.bf16.xpose.msra.mxu0 %v2463_v27  ;;  %v186_v57 = vld [vmem:[%s3149_s27 + $0x140] sm:$0xff]  ;;  %v187_v58 = vld [vmem:[%s3149_s27 + $0x148] sm:$0xff]  ;;  %v173_v60 = vld [vmem:[%s3149_s27 + $0xd8] sm:$0xff]  ;;  %v2475_v63 = vpack.c.bf16 %v155_v56, %v154_v55 }
  0x26   : > { %2496 = vmatpush3.bf16.xpose.msra.mxu1 %v2495_v28  ;;  %2466 = vmatprep.subr.bf16.mxu0 %v2465_v29  ;;  %v204_v61 = vld [vmem:[%s3149_s27 + $0x1d0] sm:$0xff]  ;;  %v205_v62 = vld [vmem:[%s3149_s27 + $0x1d8] sm:$0xff]  ;;  %v2507_v1 = vpack.c.bf16 %v187_v58, %v186_v57  ;;  %v2477_v2 = vpack.c.bf16 %v173_v60, %v172_v59  ;;  %v174_v8 = vld [vmem:[%s3149_s27 + $0xe0] sm:$0xff] }
  0x27   : > { %2498 = vmatprep.subr.bf16.mxu1 %v2497_v30  ;;  %v2509_v3 = vpack.c.bf16 %v205_v62, %v204_v61  ;;  %v156_v4 = vld [vmem:[%s3149_s27 + $0x50] sm:$0xff]  ;;  %v157_v5 = vld [vmem:[%s3149_s27 + $0x58] sm:$0xff]  ;;  %v175_v9 = vld [vmem:[%s3149_s27 + $0xe8] sm:$0xff] }
  0x28   : > { %v188_v6 = vld [vmem:[%s3149_s27 + $0x150] sm:$0xff]  ;;  %v189_v7 = vld [vmem:[%s3149_s27 + $0x158] sm:$0xff]  ;;  %v206_v10 = vld [vmem:[%s3149_s27 + $0x1e0] sm:$0xff]  ;;  %v2479_v12 = vpack.c.bf16 %v157_v5, %v156_v4  ;;  %v2481_v14 = vpack.c.bf16 %v175_v9, %v174_v8 }
  0x29   : > { %v207_v11 = vld [vmem:[%s3149_s27 + $0x1e8] sm:$0xff]  ;;  %v2511_v13 = vpack.c.bf16 %v189_v7, %v188_v6  ;;  %v158_v16 = vld [vmem:[%s3149_s27 + $0x60] sm:$0xff]  ;;  %v176_v20 = vld [vmem:[%s3149_s27 + $0xf0] sm:$0xff] }
  0x2a   : > { %v2513_v15 = vpack.c.bf16 %v207_v11, %v206_v10  ;;  %v159_v17 = vld [vmem:[%s3149_s27 + $0x68] sm:$0xff]  ;;  %v190_v18 = vld [vmem:[%s3149_s27 + $0x160] sm:$0xff]  ;;  %v177_v21 = vld [vmem:[%s3149_s27 + $0xf8] sm:$0xff] }
  0x2b   : > { %v191_v19 = vld [vmem:[%s3149_s27 + $0x168] sm:$0xff]  ;;  %v208_v22 = vld [vmem:[%s3149_s27 + $0x1f0] sm:$0xff]  ;;  %v209_v23 = vld [vmem:[%s3149_s27 + $0x1f8] sm:$0xff]  ;;  %v2483_v24 = vpack.c.bf16 %v159_v17, %v158_v16  ;;  %v2485_v26 = vpack.c.bf16 %v177_v21, %v176_v20 }
  0x2c   : > { %v2515_v25 = vpack.c.bf16 %v191_v19, %v190_v18  ;;  %v2517_v27 = vpack.c.bf16 %v209_v23, %v208_v22  ;;  %v160_v28 = vld [vmem:[%s3149_s27 + $0x70] sm:$0xff]  ;;  %v161_v29 = vld [vmem:[%s3149_s27 + $0x78] sm:$0xff]  ;;  %v226_v32 = vld [vmem:[%s3149_s27 + $0x280] sm:$0xff] }
  0x2d   : > { %2468 = vmatpush3.bf16.xpose.msra.mxu0 %v2467_v39  ;;  %v192_v30 = vld [vmem:[%s3149_s27 + $0x170] sm:$0xff]  ;;  %v193_v31 = vld [vmem:[%s3149_s27 + $0x178] sm:$0xff]  ;;  %v227_v33 = vld [vmem:[%s3149_s27 + $0x288] sm:$0xff]  ;;  %v2487_v36 = vpack.c.bf16 %v161_v29, %v160_v28 }
  0x2e   : > { %2500 = vmatpush3.bf16.xpose.msra.mxu1 %v2499_v40  ;;  %2470 = vmatprep.subr.bf16.mxu0 %v2469_v41  ;;  %v258_v34 = vld [vmem:[%s3149_s27 + $0x380] sm:$0xff]  ;;  %v259_v35 = vld [vmem:[%s3149_s27 + $0x388] sm:$0xff]  ;;  %v2519_v37 = vpack.c.bf16 %v193_v31, %v192_v30  ;;  %v2521_v38 = vpack.c.bf16 %v227_v33, %v226_v32  ;;  %v228_v44 = vld [vmem:[%s3149_s27 + $0x290] sm:$0xff] }
  0x2f   : > { %2502 = vmatprep.subr.bf16.mxu1 %v2501_v42  ;;  %v2553_v39 = vpack.c.bf16 %v259_v35, %v258_v34  ;;  %v210_v40 = vld [vmem:[%s3149_s27 + $0x200] sm:$0xff]  ;;  %v211_v41 = vld [vmem:[%s3149_s27 + $0x208] sm:$0xff]  ;;  %v229_v45 = vld [vmem:[%s3149_s27 + $0x298] sm:$0xff] }
  0x30   : > { %v242_v42 = vld [vmem:[%s3149_s27 + $0x300] sm:$0xff]  ;;  %v243_v43 = vld [vmem:[%s3149_s27 + $0x308] sm:$0xff]  ;;  %v260_v46 = vld [vmem:[%s3149_s27 + $0x390] sm:$0xff]  ;;  %v2523_v48 = vpack.c.bf16 %v211_v41, %v210_v40  ;;  %v2525_v50 = vpack.c.bf16 %v229_v45, %v228_v44 }
  0x31   : > { %v261_v47 = vld [vmem:[%s3149_s27 + $0x398] sm:$0xff]  ;;  %v2555_v49 = vpack.c.bf16 %v243_v43, %v242_v42  ;;  %v230_v56 = vld [vmem:[%s3149_s27 + $0x2a0] sm:$0xff]  ;;  %v231_v57 = vld [vmem:[%s3149_s27 + $0x2a8] sm:$0xff] }
  0x32   : > { %v245_v55 = vld [vmem:[%s3149_s27 + $0x318] sm:$0xff]  ;;  %v262_v58 = vld [vmem:[%s3149_s27 + $0x3a0] sm:$0xff]  ;;  %v263_v59 = vld [vmem:[%s3149_s27 + $0x3a8] sm:$0xff]  ;;  %v2529_v62 = vpack.c.bf16 %v231_v57, %v230_v56 }
  0x33   : > { %v247_v4 = vld [vmem:[%s3149_s27 + $0x328] sm:$0xff]  ;;  %v232_v5 = vld [vmem:[%s3149_s27 + $0x2b0] sm:$0xff]  ;;  %v233_v6 = vld [vmem:[%s3149_s27 + $0x2b8] sm:$0xff] }
  0x34   : > { %v264_v7 = vld [vmem:[%s3149_s27 + $0x3b0] sm:$0xff]  ;;  %v265_v8 = vld [vmem:[%s3149_s27 + $0x3b8] sm:$0xff]  ;;  %v2533_v11 = vpack.c.bf16 %v233_v6, %v232_v5  ;;  %v234_v17 = vld [vmem:[%s3149_s27 + $0x2c0] sm:$0xff] }
  0x35   : > { %2472 = vmatpush3.bf16.xpose.msra.mxu0 %v2471_v51  ;;  %v2557_v51 = vpack.c.bf16 %v261_v47, %v260_v46  ;;  %v249_v16 = vld [vmem:[%s3149_s27 + $0x338] sm:$0xff]  ;;  %v235_v18 = vld [vmem:[%s3149_s27 + $0x2c8] sm:$0xff]  ;;  %v266_v19 = vld [vmem:[%s3149_s27 + $0x3c0] sm:$0xff] }
  0x36   : > { %2504 = vmatpush3.bf16.xpose.msra.mxu1 %v2503_v52  ;;  %2474 = vmatprep.subr.bf16.mxu0 %v2473_v53  ;;  %v212_v52 = vld [vmem:[%s3149_s27 + $0x210] sm:$0xff]  ;;  %v213_v53 = vld [vmem:[%s3149_s27 + $0x218] sm:$0xff]  ;;  %v267_v20 = vld [vmem:[%s3149_s27 + $0x3c8] sm:$0xff]  ;;  %v2537_v23 = vpack.c.bf16 %v235_v18, %v234_v17 }
  0x37   : > { %2506 = vmatprep.subr.bf16.mxu1 %v2505_v54  ;;  %v244_v54 = vld [vmem:[%s3149_s27 + $0x310] sm:$0xff]  ;;  %v2527_v60 = vpack.c.bf16 %v213_v53, %v212_v52  ;;  %v251_v28 = vld [vmem:[%s3149_s27 + $0x348] sm:$0xff]  ;;  %v237_v30 = vld [vmem:[%s3149_s27 + $0x2d8] sm:$0xff] }
  0x38   : > { %v2559_v61 = vpack.c.bf16 %v245_v55, %v244_v54  ;;  %v236_v29 = vld [vmem:[%s3149_s27 + $0x2d0] sm:$0xff]  ;;  %v269_v32 = vld [vmem:[%s3149_s27 + $0x3d8] sm:$0xff]  ;;  %v238_v41 = vld [vmem:[%s3149_s27 + $0x2e0] sm:$0xff] }
  0x39   : > { %v268_v31 = vld [vmem:[%s3149_s27 + $0x3d0] sm:$0xff]  ;;  %v2541_v35 = vpack.c.bf16 %v237_v30, %v236_v29  ;;  %v253_v40 = vld [vmem:[%s3149_s27 + $0x358] sm:$0xff]  ;;  %v239_v42 = vld [vmem:[%s3149_s27 + $0x2e8] sm:$0xff] }
  0x3a   : > { %v270_v43 = vld [vmem:[%s3149_s27 + $0x3e0] sm:$0xff]  ;;  %v271_v44 = vld [vmem:[%s3149_s27 + $0x3e8] sm:$0xff]  ;;  %v2545_v47 = vpack.c.bf16 %v239_v42, %v238_v41  ;;  %v240_v53 = vld [vmem:[%s3149_s27 + $0x2f0] sm:$0xff] }
  0x3b   : > { %v255_v52 = vld [vmem:[%s3149_s27 + $0x368] sm:$0xff]  ;;  %v241_v54 = vld [vmem:[%s3149_s27 + $0x2f8] sm:$0xff]  ;;  %v272_v55 = vld [vmem:[%s3149_s27 + $0x3f0] sm:$0xff] }
  0x3c   : > { %v273_v56 = vld [vmem:[%s3149_s27 + $0x3f8] sm:$0xff]  ;;  %v323_v5 = vld [vmem:[%s3149_s27 + $0x588] sm:$0xff] }
  0x3d   : > { %2476 = vmatpush3.bf16.xpose.msra.mxu0 %v2475_v63  ;;  %v2561_v63 = vpack.c.bf16 %v263_v59, %v262_v58  ;;  %v2549_v59 = vpack.c.bf16 %v241_v54, %v240_v53  ;;  %v325_v17 = vld [vmem:[%s3149_s27 + $0x598] sm:$0xff]  ;;  %v327_v29 = vld [vmem:[%s3149_s27 + $0x5a8] sm:$0xff] }
  0x3e   : > { %2508 = vmatpush3.bf16.xpose.msra.mxu1 %v2507_v1  ;;  %2478 = vmatprep.subr.bf16.mxu0 %v2477_v2  ;;  %v214_v1 = vld [vmem:[%s3149_s27 + $0x220] sm:$0xff]  ;;  %v215_v2 = vld [vmem:[%s3149_s27 + $0x228] sm:$0xff]  ;;  %v329_v41 = vld [vmem:[%s3149_s27 + $0x5b8] sm:$0xff] }
  0x3f   : > { %2510 = vmatprep.subr.bf16.mxu1 %v2509_v3  ;;  %v246_v3 = vld [vmem:[%s3149_s27 + $0x320] sm:$0xff]  ;;  %v2531_v9 = vpack.c.bf16 %v215_v2, %v214_v1  ;;  %v257_v1 = vld [vmem:[%s3149_s27 + $0x378] sm:$0xff]  ;;  %v331_v53 = vld [vmem:[%s3149_s27 + $0x5c8] sm:$0xff] }
  0x40   : > { %v2563_v10 = vpack.c.bf16 %v247_v4, %v246_v3  ;;  %v290_v2 = vld [vmem:[%s3149_s27 + $0x480] sm:$0xff]  ;;  %v291_v3 = vld [vmem:[%s3149_s27 + $0x488] sm:$0xff] }
  0x41   : > { %v322_v4 = vld [vmem:[%s3149_s27 + $0x580] sm:$0xff] }
  0x45   : > { %2480 = vmatpush3.bf16.xpose.msra.mxu0 %v2479_v12  ;;  %v2565_v12 = vpack.c.bf16 %v265_v8, %v264_v7  ;;  %v2585_v8 = vpack.c.bf16 %v291_v3, %v290_v2  ;;  %v333_v2 = vld [vmem:[%s3149_s27 + $0x5d8] sm:$0xff] }
  0x46   : > { %2512 = vmatpush3.bf16.xpose.msra.mxu1 %v2511_v13  ;;  %2482 = vmatprep.subr.bf16.mxu0 %v2481_v14  ;;  %v216_v13 = vld [vmem:[%s3149_s27 + $0x230] sm:$0xff]  ;;  %v217_v14 = vld [vmem:[%s3149_s27 + $0x238] sm:$0xff] }
  0x47   : > { %2514 = vmatprep.subr.bf16.mxu1 %v2513_v15  ;;  %v248_v15 = vld [vmem:[%s3149_s27 + $0x330] sm:$0xff]  ;;  %v2535_v21 = vpack.c.bf16 %v217_v14, %v216_v13  ;;  %v307_v13 = vld [vmem:[%s3149_s27 + $0x508] sm:$0xff] }
  0x48   : > { %v2567_v22 = vpack.c.bf16 %v249_v16, %v248_v15  ;;  %v292_v14 = vld [vmem:[%s3149_s27 + $0x490] sm:$0xff]  ;;  %v293_v15 = vld [vmem:[%s3149_s27 + $0x498] sm:$0xff] }
  0x49   : > { %v324_v16 = vld [vmem:[%s3149_s27 + $0x590] sm:$0xff] }
  0x4d   : > { %2484 = vmatpush3.bf16.xpose.msra.mxu0 %v2483_v24  ;;  %v2569_v24 = vpack.c.bf16 %v267_v20, %v266_v19  ;;  %v2589_v20 = vpack.c.bf16 %v293_v15, %v292_v14  ;;  %v335_v14 = vld [vmem:[%s3149_s27 + $0x5e8] sm:$0xff] }
  0x4e   : > { %2516 = vmatpush3.bf16.xpose.msra.mxu1 %v2515_v25  ;;  %2486 = vmatprep.subr.bf16.mxu0 %v2485_v26  ;;  %v218_v25 = vld [vmem:[%s3149_s27 + $0x240] sm:$0xff]  ;;  %v219_v26 = vld [vmem:[%s3149_s27 + $0x248] sm:$0xff] }
  0x4f   : > { %2518 = vmatprep.subr.bf16.mxu1 %v2517_v27  ;;  %v250_v27 = vld [vmem:[%s3149_s27 + $0x340] sm:$0xff]  ;;  %v2539_v33 = vpack.c.bf16 %v219_v26, %v218_v25  ;;  %v309_v25 = vld [vmem:[%s3149_s27 + $0x518] sm:$0xff] }
  0x50   : > { %v2571_v34 = vpack.c.bf16 %v251_v28, %v250_v27  ;;  %v294_v26 = vld [vmem:[%s3149_s27 + $0x4a0] sm:$0xff]  ;;  %v295_v27 = vld [vmem:[%s3149_s27 + $0x4a8] sm:$0xff] }
  0x51   : > { %v326_v28 = vld [vmem:[%s3149_s27 + $0x5a0] sm:$0xff] }
  0x55   : > { %2488 = vmatpush3.bf16.xpose.msra.mxu0 %v2487_v36  ;;  %v2573_v36 = vpack.c.bf16 %v269_v32, %v268_v31  ;;  %v2593_v32 = vpack.c.bf16 %v295_v27, %v294_v26  ;;  %v337_v26 = vld [vmem:[%s3149_s27 + $0x5f8] sm:$0xff] }
  0x56   : > { %2520 = vmatpush3.bf16.xpose.msra.mxu1 %v2519_v37  ;;  %2522 = vmatprep.subr.bf16.mxu0 %v2521_v38  ;;  %v220_v37 = vld [vmem:[%s3149_s27 + $0x250] sm:$0xff]  ;;  %v221_v38 = vld [vmem:[%s3149_s27 + $0x258] sm:$0xff] }
  0x57   : > { %2554 = vmatprep.subr.bf16.mxu1 %v2553_v39  ;;  %v252_v39 = vld [vmem:[%s3149_s27 + $0x350] sm:$0xff]  ;;  %v2543_v45 = vpack.c.bf16 %v221_v38, %v220_v37  ;;  %v311_v37 = vld [vmem:[%s3149_s27 + $0x528] sm:$0xff] }
  0x58   : > { %v2575_v46 = vpack.c.bf16 %v253_v40, %v252_v39  ;;  %v296_v38 = vld [vmem:[%s3149_s27 + $0x4b0] sm:$0xff]  ;;  %v297_v39 = vld [vmem:[%s3149_s27 + $0x4b8] sm:$0xff] }
  0x59   : > { %v328_v40 = vld [vmem:[%s3149_s27 + $0x5b0] sm:$0xff] }
  0x5c   : > { %1946 = vmatmul.mubr.f32.vlgmr.msra.gmra.mrb[0].mxu0 %v3142_v0 }
  0x5d   : > { %1980 = vmatmul.mubr.f32.vlgmr.msra.gmra.mrb[0].mxu1 %v3142_v0  ;;  %2524 = vmatpush3.bf16.xpose.msra.mxu0 %v2523_v48  ;;  %v2577_v48 = vpack.c.bf16 %v271_v44, %v270_v43  ;;  %v2597_v44 = vpack.c.bf16 %v297_v39, %v296_v38  ;;  %v387_v38 = vld [vmem:[%s3149_s27 + $0x788] sm:$0xff] }
  0x5e   : > { %2556 = vmatpush3.bf16.xpose.msra.mxu1 %v2555_v49  ;;  %2526 = vmatprep.subr.bf16.mxu0 %v2525_v50  ;;  %v222_v49 = vld [vmem:[%s3149_s27 + $0x260] sm:$0xff]  ;;  %v223_v50 = vld [vmem:[%s3149_s27 + $0x268] sm:$0xff] }
  0x5f   : > { %2558 = vmatprep.subr.bf16.mxu1 %v2557_v51  ;;  %2013 = vmatprep.mubr.f32.mxu0 %v3142_v0  ;;  %v254_v51 = vld [vmem:[%s3149_s27 + $0x360] sm:$0xff]  ;;  %v2547_v57 = vpack.c.bf16 %v223_v50, %v222_v49  ;;  %v313_v49 = vld [vmem:[%s3149_s27 + $0x538] sm:$0xff] }
  0x60   : > { %2047 = vmatprep.mubr.f32.mxu1 %v3142_v0  ;;  %v2579_v58 = vpack.c.bf16 %v255_v52, %v254_v51  ;;  %v298_v50 = vld [vmem:[%s3149_s27 + $0x4c0] sm:$0xff]  ;;  %v299_v51 = vld [vmem:[%s3149_s27 + $0x4c8] sm:$0xff] }
  0x61   : > { %v330_v52 = vld [vmem:[%s3149_s27 + $0x5c0] sm:$0xff] }
  0x65   : > { %2528 = vmatpush3.bf16.xpose.msra.mxu0 %v2527_v60  ;;  %v2581_v60 = vpack.c.bf16 %v273_v56, %v272_v55  ;;  %v2601_v56 = vpack.c.bf16 %v299_v51, %v298_v50  ;;  %v389_v50 = vld [vmem:[%s3149_s27 + $0x798] sm:$0xff] }
  0x66   : > { %2560 = vmatpush3.bf16.xpose.msra.mxu1 %v2559_v61  ;;  %2530 = vmatprep.subr.bf16.mxu0 %v2529_v62  ;;  %v224_v61 = vld [vmem:[%s3149_s27 + $0x270] sm:$0xff]  ;;  %v225_v62 = vld [vmem:[%s3149_s27 + $0x278] sm:$0xff] }
  0x67   : > { %2562 = vmatprep.subr.bf16.mxu1 %v2561_v63  ;;  %v256_v63 = vld [vmem:[%s3149_s27 + $0x370] sm:$0xff]  ;;  %v2551_v6 = vpack.c.bf16 %v225_v62, %v224_v61  ;;  %v315_v61 = vld [vmem:[%s3149_s27 + $0x548] sm:$0xff] }
  0x68   : > { %v2583_v7 = vpack.c.bf16 %v257_v1, %v256_v63  ;;  %v300_v62 = vld [vmem:[%s3149_s27 + $0x4d0] sm:$0xff]  ;;  %v301_v63 = vld [vmem:[%s3149_s27 + $0x4d8] sm:$0xff] }
  0x69   : > { %v332_v1 = vld [vmem:[%s3149_s27 + $0x5d0] sm:$0xff] }
  0x6d   : > { %2532 = vmatpush3.bf16.xpose.msra.mxu0 %v2531_v9  ;;  %v2617_v9 = vpack.c.bf16 %v323_v5, %v322_v4  ;;  %v2605_v5 = vpack.c.bf16 %v301_v63, %v300_v62  ;;  %v391_v62 = vld [vmem:[%s3149_s27 + $0x7a8] sm:$0xff] }
  0x6e   : > { %2564 = vmatpush3.bf16.xpose.msra.mxu1 %v2563_v10  ;;  %2534 = vmatprep.subr.bf16.mxu0 %v2533_v11  ;;  %v274_v10 = vld [vmem:[%s3149_s27 + $0x400] sm:$0xff]  ;;  %v275_v11 = vld [vmem:[%s3149_s27 + $0x408] sm:$0xff] }
  0x6f   : > { %2566 = vmatprep.subr.bf16.mxu1 %v2565_v12  ;;  %v306_v12 = vld [vmem:[%s3149_s27 + $0x500] sm:$0xff]  ;;  %v2587_v18 = vpack.c.bf16 %v275_v11, %v274_v10  ;;  %v317_v10 = vld [vmem:[%s3149_s27 + $0x558] sm:$0xff] }
  0x70   : > { %v2619_v19 = vpack.c.bf16 %v307_v13, %v306_v12  ;;  %v302_v11 = vld [vmem:[%s3149_s27 + $0x4e0] sm:$0xff]  ;;  %v303_v12 = vld [vmem:[%s3149_s27 + $0x4e8] sm:$0xff] }
  0x71   : > { %v334_v13 = vld [vmem:[%s3149_s27 + $0x5e0] sm:$0xff] }
  0x75   : > { %2536 = vmatpush3.bf16.xpose.msra.mxu0 %v2535_v21  ;;  %v2621_v21 = vpack.c.bf16 %v325_v17, %v324_v16  ;;  %v2609_v17 = vpack.c.bf16 %v303_v12, %v302_v11 }
  0x76   : > { %2568 = vmatpush3.bf16.xpose.msra.mxu1 %v2567_v22  ;;  %2538 = vmatprep.subr.bf16.mxu0 %v2537_v23  ;;  %v276_v22 = vld [vmem:[%s3149_s27 + $0x410] sm:$0xff]  ;;  %v277_v23 = vld [vmem:[%s3149_s27 + $0x418] sm:$0xff] }
  0x77   : > { %2570 = vmatprep.subr.bf16.mxu1 %v2569_v24  ;;  %v308_v24 = vld [vmem:[%s3149_s27 + $0x510] sm:$0xff]  ;;  %v2591_v30 = vpack.c.bf16 %v277_v23, %v276_v22  ;;  %v319_v22 = vld [vmem:[%s3149_s27 + $0x568] sm:$0xff] }
  0x78   : > { %v2623_v31 = vpack.c.bf16 %v309_v25, %v308_v24  ;;  %v304_v23 = vld [vmem:[%s3149_s27 + $0x4f0] sm:$0xff]  ;;  %v305_v24 = vld [vmem:[%s3149_s27 + $0x4f8] sm:$0xff] }
  0x79   : > { %v336_v25 = vld [vmem:[%s3149_s27 + $0x5f0] sm:$0xff] }
  0x7d   : > { %2540 = vmatpush3.bf16.xpose.msra.mxu0 %v2539_v33  ;;  %v2625_v33 = vpack.c.bf16 %v327_v29, %v326_v28  ;;  %v2613_v29 = vpack.c.bf16 %v305_v24, %v304_v23 }
  0x7e   : > { %2572 = vmatpush3.bf16.xpose.msra.mxu1 %v2571_v34  ;;  %2542 = vmatprep.subr.bf16.mxu0 %v2541_v35  ;;  %v278_v34 = vld [vmem:[%s3149_s27 + $0x420] sm:$0xff]  ;;  %v279_v35 = vld [vmem:[%s3149_s27 + $0x428] sm:$0xff] }
  0x7f   : > { %2574 = vmatprep.subr.bf16.mxu1 %v2573_v36  ;;  %v310_v36 = vld [vmem:[%s3149_s27 + $0x520] sm:$0xff]  ;;  %v2595_v42 = vpack.c.bf16 %v279_v35, %v278_v34  ;;  %v321_v34 = vld [vmem:[%s3149_s27 + $0x578] sm:$0xff] }
  0x80   : > { %v2627_v43 = vpack.c.bf16 %v311_v37, %v310_v36  ;;  %v354_v35 = vld [vmem:[%s3149_s27 + $0x680] sm:$0xff]  ;;  %v355_v36 = vld [vmem:[%s3149_s27 + $0x688] sm:$0xff] }
  0x81   : > { %v386_v37 = vld [vmem:[%s3149_s27 + $0x780] sm:$0xff] }
  0x85   : > { %2544 = vmatpush3.bf16.xpose.msra.mxu0 %v2543_v45  ;;  %v2629_v45 = vpack.c.bf16 %v329_v41, %v328_v40  ;;  %v2649_v41 = vpack.c.bf16 %v355_v36, %v354_v35 }
  0x86   : > { %2576 = vmatpush3.bf16.xpose.msra.mxu1 %v2575_v46  ;;  %2546 = vmatprep.subr.bf16.mxu0 %v2545_v47  ;;  %v280_v46 = vld [vmem:[%s3149_s27 + $0x430] sm:$0xff]  ;;  %v281_v47 = vld [vmem:[%s3149_s27 + $0x438] sm:$0xff] }
  0x87   : > { %2578 = vmatprep.subr.bf16.mxu1 %v2577_v48  ;;  %v312_v48 = vld [vmem:[%s3149_s27 + $0x530] sm:$0xff]  ;;  %v2599_v54 = vpack.c.bf16 %v281_v47, %v280_v46  ;;  %v371_v46 = vld [vmem:[%s3149_s27 + $0x708] sm:$0xff] }
  0x88   : > { %v2631_v55 = vpack.c.bf16 %v313_v49, %v312_v48  ;;  %v356_v47 = vld [vmem:[%s3149_s27 + $0x690] sm:$0xff]  ;;  %v357_v48 = vld [vmem:[%s3149_s27 + $0x698] sm:$0xff] }
  0x89   : > { %v388_v49 = vld [vmem:[%s3149_s27 + $0x790] sm:$0xff] }
  0x8d   : > { %2548 = vmatpush3.bf16.xpose.msra.mxu0 %v2547_v57  ;;  %v2633_v57 = vpack.c.bf16 %v331_v53, %v330_v52  ;;  %v2653_v53 = vpack.c.bf16 %v357_v48, %v356_v47 }
  0x8e   : > { %2580 = vmatpush3.bf16.xpose.msra.mxu1 %v2579_v58  ;;  %2550 = vmatprep.subr.bf16.mxu0 %v2549_v59  ;;  %v282_v58 = vld [vmem:[%s3149_s27 + $0x440] sm:$0xff]  ;;  %v283_v59 = vld [vmem:[%s3149_s27 + $0x448] sm:$0xff] }
  0x8f   : > { %2582 = vmatprep.subr.bf16.mxu1 %v2581_v60  ;;  %v314_v60 = vld [vmem:[%s3149_s27 + $0x540] sm:$0xff]  ;;  %v2603_v3 = vpack.c.bf16 %v283_v59, %v282_v58  ;;  %v373_v58 = vld [vmem:[%s3149_s27 + $0x718] sm:$0xff] }
  0x90   : > { %v2635_v4 = vpack.c.bf16 %v315_v61, %v314_v60  ;;  %v358_v59 = vld [vmem:[%s3149_s27 + $0x6a0] sm:$0xff]  ;;  %v359_v60 = vld [vmem:[%s3149_s27 + $0x6a8] sm:$0xff] }
  0x91   : > { %v390_v61 = vld [vmem:[%s3149_s27 + $0x7a0] sm:$0xff] }
  0x95   : > { %2552 = vmatpush3.bf16.xpose.msra.mxu0 %v2551_v6  ;;  %v2637_v6 = vpack.c.bf16 %v333_v2, %v332_v1  ;;  %v2657_v2 = vpack.c.bf16 %v359_v60, %v358_v59 }
  0x96   : > { %2584 = vmatpush3.bf16.xpose.msra.mxu1 %v2583_v7  ;;  %2586 = vmatprep.subr.bf16.mxu0 %v2585_v8  ;;  %v284_v7 = vld [vmem:[%s3149_s27 + $0x450] sm:$0xff]  ;;  %v285_v8 = vld [vmem:[%s3149_s27 + $0x458] sm:$0xff] }
  0x97   : > { %2618 = vmatprep.subr.bf16.mxu1 %v2617_v9  ;;  %v316_v9 = vld [vmem:[%s3149_s27 + $0x550] sm:$0xff]  ;;  %v2607_v15 = vpack.c.bf16 %v285_v8, %v284_v7  ;;  %v375_v7 = vld [vmem:[%s3149_s27 + $0x728] sm:$0xff] }
  0x98   : > { %v2639_v16 = vpack.c.bf16 %v317_v10, %v316_v9  ;;  %v360_v8 = vld [vmem:[%s3149_s27 + $0x6b0] sm:$0xff]  ;;  %v393_v10 = vld [vmem:[%s3149_s27 + $0x7b8] sm:$0xff] }
  0x99   : > { %v392_v9 = vld [vmem:[%s3149_s27 + $0x7b0] sm:$0xff] }
  0x9c   : > { %2014 = vmatmul.mubr.f32.vlgmr.msra.gmra.mrb[2].mxu0 %v3142_v0 }
  0x9d   : > { %2048 = vmatmul.mubr.f32.vlgmr.msra.gmra.mrb[2].mxu1 %v3142_v0  ;;  %2588 = vmatpush3.bf16.xpose.msra.mxu0 %v2587_v18  ;;  %v2641_v18 = vpack.c.bf16 %v335_v14, %v334_v13  ;;  %v2693_v14 = vpack.c.bf16 %v393_v10, %v392_v9 }
  0x9e   : > { %2620 = vmatpush3.bf16.xpose.msra.mxu1 %v2619_v19  ;;  %2590 = vmatprep.subr.bf16.mxu0 %v2589_v20  ;;  %v286_v19 = vld [vmem:[%s3149_s27 + $0x460] sm:$0xff]  ;;  %v287_v20 = vld [vmem:[%s3149_s27 + $0x468] sm:$0xff] }
  0x9f   : > { %2622 = vmatprep.subr.bf16.mxu1 %v2621_v21  ;;  %2081 = vmatprep.mubr.f32.mxu0 %v3142_v0  ;;  %v318_v21 = vld [vmem:[%s3149_s27 + $0x560] sm:$0xff]  ;;  %v2611_v27 = vpack.c.bf16 %v287_v20, %v286_v19  ;;  %v363_v20 = vld [vmem:[%s3149_s27 + $0x6c8] sm:$0xff] }
  0xa0   : > { %2115 = vmatprep.mubr.f32.mxu1 %v3142_v0  ;;  %v2643_v28 = vpack.c.bf16 %v319_v22, %v318_v21  ;;  %v362_v19 = vld [vmem:[%s3149_s27 + $0x6c0] sm:$0xff]  ;;  %v395_v22 = vld [vmem:[%s3149_s27 + $0x7c8] sm:$0xff] }
  0xa1   : > { %v394_v21 = vld [vmem:[%s3149_s27 + $0x7c0] sm:$0xff] }
  0xa5   : > { %2592 = vmatpush3.bf16.xpose.msra.mxu0 %v2591_v30  ;;  %v2645_v30 = vpack.c.bf16 %v337_v26, %v336_v25  ;;  %v2665_v25 = vpack.c.bf16 %v363_v20, %v362_v19  ;;  %v2697_v26 = vpack.c.bf16 %v395_v22, %v394_v21 }
  0xa6   : > { %2624 = vmatpush3.bf16.xpose.msra.mxu1 %v2623_v31  ;;  %2594 = vmatprep.subr.bf16.mxu0 %v2593_v32  ;;  %v288_v31 = vld [vmem:[%s3149_s27 + $0x470] sm:$0xff]  ;;  %v289_v32 = vld [vmem:[%s3149_s27 + $0x478] sm:$0xff] }
  0xa7   : > { %2626 = vmatprep.subr.bf16.mxu1 %v2625_v33  ;;  %v320_v33 = vld [vmem:[%s3149_s27 + $0x570] sm:$0xff]  ;;  %v2615_v39 = vpack.c.bf16 %v289_v32, %v288_v31  ;;  %v365_v32 = vld [vmem:[%s3149_s27 + $0x6d8] sm:$0xff] }
  0xa8   : > { %v2647_v40 = vpack.c.bf16 %v321_v34, %v320_v33  ;;  %v364_v31 = vld [vmem:[%s3149_s27 + $0x6d0] sm:$0xff]  ;;  %v397_v34 = vld [vmem:[%s3149_s27 + $0x7d8] sm:$0xff] }
  0xa9   : > { %v396_v33 = vld [vmem:[%s3149_s27 + $0x7d0] sm:$0xff] }
  0xad   : > { %2596 = vmatpush3.bf16.xpose.msra.mxu0 %v2595_v42  ;;  %v2681_v42 = vpack.c.bf16 %v387_v38, %v386_v37  ;;  %v2669_v37 = vpack.c.bf16 %v365_v32, %v364_v31  ;;  %v2701_v38 = vpack.c.bf16 %v397_v34, %v396_v33  ;;  %v455_v31 = vld [vmem:[%s3149_s27 + $0x9a8] sm:$0xff] }
  0xae   : > { %2628 = vmatpush3.bf16.xpose.msra.mxu1 %v2627_v43  ;;  %2598 = vmatprep.subr.bf16.mxu0 %v2597_v44  ;;  %v338_v43 = vld [vmem:[%s3149_s27 + $0x600] sm:$0xff]  ;;  %v339_v44 = vld [vmem:[%s3149_s27 + $0x608] sm:$0xff] }
  0xaf   : > { %2630 = vmatprep.subr.bf16.mxu1 %v2629_v45  ;;  %v370_v45 = vld [vmem:[%s3149_s27 + $0x700] sm:$0xff]  ;;  %v2651_v51 = vpack.c.bf16 %v339_v44, %v338_v43  ;;  %v367_v44 = vld [vmem:[%s3149_s27 + $0x6e8] sm:$0xff] }
  0xb0   : > { %v2683_v52 = vpack.c.bf16 %v371_v46, %v370_v45  ;;  %v366_v43 = vld [vmem:[%s3149_s27 + $0x6e0] sm:$0xff]  ;;  %v399_v46 = vld [vmem:[%s3149_s27 + $0x7e8] sm:$0xff] }
  0xb1   : > { %v398_v45 = vld [vmem:[%s3149_s27 + $0x7e0] sm:$0xff] }
  0xb5   : > { %2600 = vmatpush3.bf16.xpose.msra.mxu0 %v2599_v54  ;;  %v2685_v54 = vpack.c.bf16 %v389_v50, %v388_v49  ;;  %v2673_v49 = vpack.c.bf16 %v367_v44, %v366_v43  ;;  %v2705_v50 = vpack.c.bf16 %v399_v46, %v398_v45  ;;  %v457_v43 = vld [vmem:[%s3149_s27 + $0x9b8] sm:$0xff] }
  0xb6   : > { %2632 = vmatpush3.bf16.xpose.msra.mxu1 %v2631_v55  ;;  %2602 = vmatprep.subr.bf16.mxu0 %v2601_v56  ;;  %v340_v55 = vld [vmem:[%s3149_s27 + $0x610] sm:$0xff]  ;;  %v341_v56 = vld [vmem:[%s3149_s27 + $0x618] sm:$0xff] }
  0xb7   : > { %2634 = vmatprep.subr.bf16.mxu1 %v2633_v57  ;;  %v372_v57 = vld [vmem:[%s3149_s27 + $0x710] sm:$0xff]  ;;  %v2655_v63 = vpack.c.bf16 %v341_v56, %v340_v55  ;;  %v369_v56 = vld [vmem:[%s3149_s27 + $0x6f8] sm:$0xff] }
  0xb8   : > { %v2687_v1 = vpack.c.bf16 %v373_v58, %v372_v57  ;;  %v368_v55 = vld [vmem:[%s3149_s27 + $0x6f0] sm:$0xff]  ;;  %v401_v58 = vld [vmem:[%s3149_s27 + $0x7f8] sm:$0xff] }
  0xb9   : > { %v400_v57 = vld [vmem:[%s3149_s27 + $0x7f0] sm:$0xff] }
  0xbd   : > { %2604 = vmatpush3.bf16.xpose.msra.mxu0 %v2603_v3  ;;  %v2689_v3 = vpack.c.bf16 %v391_v62, %v390_v61  ;;  %v2677_v61 = vpack.c.bf16 %v369_v56, %v368_v55  ;;  %v2709_v62 = vpack.c.bf16 %v401_v58, %v400_v57  ;;  %v458_v57 = vld [vmem:[%s3149_s27 + $0x9c0] sm:$0xff]  ;;  %v459_v58 = vld [vmem:[%s3149_s27 + $0x9c8] sm:$0xff] }
  0xbe   : > { %2636 = vmatpush3.bf16.xpose.msra.mxu1 %v2635_v4  ;;  %2606 = vmatprep.subr.bf16.mxu0 %v2605_v5  ;;  %v342_v4 = vld [vmem:[%s3149_s27 + $0x620] sm:$0xff]  ;;  %v343_v5 = vld [vmem:[%s3149_s27 + $0x628] sm:$0xff] }
  0xbf   : > { %2638 = vmatprep.subr.bf16.mxu1 %v2637_v6  ;;  %v374_v6 = vld [vmem:[%s3149_s27 + $0x720] sm:$0xff]  ;;  %v2659_v11 = vpack.c.bf16 %v343_v5, %v342_v4  ;;  %v419_v5 = vld [vmem:[%s3149_s27 + $0x888] sm:$0xff] }
  0xc0   : > { %v2691_v12 = vpack.c.bf16 %v375_v7, %v374_v6  ;;  %v418_v4 = vld [vmem:[%s3149_s27 + $0x880] sm:$0xff]  ;;  %v451_v7 = vld [vmem:[%s3149_s27 + $0x988] sm:$0xff] }
  0xc1   : > { %v450_v6 = vld [vmem:[%s3149_s27 + $0x980] sm:$0xff]  ;;  %v2713_v9 = vpack.c.bf16 %v419_v5, %v418_v4  ;;  %v443_v4 = vld [vmem:[%s3149_s27 + $0x948] sm:$0xff]  ;;  %v428_v5 = vld [vmem:[%s3149_s27 + $0x8d0] sm:$0xff] }
  0xc2   : > { %v2745_v10 = vpack.c.bf16 %v451_v7, %v450_v6  ;;  %v429_v6 = vld [vmem:[%s3149_s27 + $0x8d8] sm:$0xff]  ;;  %v460_v7 = vld [vmem:[%s3149_s27 + $0x9d0] sm:$0xff] }
  0xc5   : > { %2608 = vmatpush3.bf16.xpose.msra.mxu0 %v2607_v15  ;;  %v344_v15 = vld [vmem:[%s3149_s27 + $0x630] sm:$0xff] }
  0xc6   : > { %2640 = vmatpush3.bf16.xpose.msra.mxu1 %v2639_v16  ;;  %2610 = vmatprep.subr.bf16.mxu0 %v2609_v17  ;;  %v345_v16 = vld [vmem:[%s3149_s27 + $0x638] sm:$0xff]  ;;  %v376_v17 = vld [vmem:[%s3149_s27 + $0x730] sm:$0xff] }
  0xc7   : > { %2642 = vmatprep.subr.bf16.mxu1 %v2641_v18  ;;  %v377_v18 = vld [vmem:[%s3149_s27 + $0x738] sm:$0xff]  ;;  %v2663_v23 = vpack.c.bf16 %v345_v16, %v344_v15  ;;  %v420_v15 = vld [vmem:[%s3149_s27 + $0x890] sm:$0xff] }
  0xc8   : > { %v2695_v24 = vpack.c.bf16 %v377_v18, %v376_v17  ;;  %v421_v16 = vld [vmem:[%s3149_s27 + $0x898] sm:$0xff]  ;;  %v452_v17 = vld [vmem:[%s3149_s27 + $0x990] sm:$0xff] }
  0xc9   : > { %v453_v18 = vld [vmem:[%s3149_s27 + $0x998] sm:$0xff]  ;;  %v2717_v21 = vpack.c.bf16 %v421_v16, %v420_v15  ;;  %v430_v16 = vld [vmem:[%s3149_s27 + $0x8e0] sm:$0xff] }
  0xca   : > { %v2749_v22 = vpack.c.bf16 %v453_v18, %v452_v17  ;;  %v445_v15 = vld [vmem:[%s3149_s27 + $0x958] sm:$0xff]  ;;  %v431_v17 = vld [vmem:[%s3149_s27 + $0x8e8] sm:$0xff]  ;;  %v462_v18 = vld [vmem:[%s3149_s27 + $0x9e0] sm:$0xff] }
  0xcd   : > { %2612 = vmatpush3.bf16.xpose.msra.mxu0 %v2611_v27  ;;  %v346_v27 = vld [vmem:[%s3149_s27 + $0x640] sm:$0xff] }
  0xce   : > { %2644 = vmatpush3.bf16.xpose.msra.mxu1 %v2643_v28  ;;  %2614 = vmatprep.subr.bf16.mxu0 %v2613_v29  ;;  %v347_v28 = vld [vmem:[%s3149_s27 + $0x648] sm:$0xff]  ;;  %v378_v29 = vld [vmem:[%s3149_s27 + $0x740] sm:$0xff] }
  0xcf   : > { %2646 = vmatprep.subr.bf16.mxu1 %v2645_v30  ;;  %v379_v30 = vld [vmem:[%s3149_s27 + $0x748] sm:$0xff]  ;;  %v2667_v35 = vpack.c.bf16 %v347_v28, %v346_v27  ;;  %v437_v27 = vld [vmem:[%s3149_s27 + $0x918] sm:$0xff]  ;;  %v422_v28 = vld [vmem:[%s3149_s27 + $0x8a0] sm:$0xff] }
  0xd0   : > { %v2699_v36 = vpack.c.bf16 %v379_v30, %v378_v29  ;;  %v423_v29 = vld [vmem:[%s3149_s27 + $0x8a8] sm:$0xff]  ;;  %v454_v30 = vld [vmem:[%s3149_s27 + $0x9a0] sm:$0xff] }
  0xd1   : > { %v2721_v34 = vpack.c.bf16 %v423_v29, %v422_v28  ;;  %v447_v28 = vld [vmem:[%s3149_s27 + $0x968] sm:$0xff]  ;;  %v432_v29 = vld [vmem:[%s3149_s27 + $0x8f0] sm:$0xff] }
  0xd5   : > { %2616 = vmatpush3.bf16.xpose.msra.mxu0 %v2615_v39  ;;  %v348_v39 = vld [vmem:[%s3149_s27 + $0x650] sm:$0xff] }
  0xd6   : > { %2648 = vmatpush3.bf16.xpose.msra.mxu1 %v2647_v40  ;;  %2650 = vmatprep.subr.bf16.mxu0 %v2649_v41  ;;  %v349_v40 = vld [vmem:[%s3149_s27 + $0x658] sm:$0xff]  ;;  %v380_v41 = vld [vmem:[%s3149_s27 + $0x750] sm:$0xff] }
  0xd7   : > { %2682 = vmatprep.subr.bf16.mxu1 %v2681_v42  ;;  %v381_v42 = vld [vmem:[%s3149_s27 + $0x758] sm:$0xff]  ;;  %v2671_v47 = vpack.c.bf16 %v349_v40, %v348_v39  ;;  %v439_v39 = vld [vmem:[%s3149_s27 + $0x928] sm:$0xff]  ;;  %v424_v40 = vld [vmem:[%s3149_s27 + $0x8b0] sm:$0xff] }
  0xd8   : > { %v2703_v48 = vpack.c.bf16 %v381_v42, %v380_v41  ;;  %v425_v41 = vld [vmem:[%s3149_s27 + $0x8b8] sm:$0xff]  ;;  %v456_v42 = vld [vmem:[%s3149_s27 + $0x9b0] sm:$0xff] }
  0xd9   : > { %v2725_v46 = vpack.c.bf16 %v425_v41, %v424_v40  ;;  %v449_v40 = vld [vmem:[%s3149_s27 + $0x978] sm:$0xff]  ;;  %v482_v41 = vld [vmem:[%s3149_s27 + $0xa80] sm:$0xff] }
  0xdc   : > { %2082 = vmatmul.mubr.f32.vlgmr.msra.gmra.mrb[4].mxu0 %v3142_v0 }
  0xdd   : > { %2116 = vmatmul.mubr.f32.vlgmr.msra.gmra.mrb[4].mxu1 %v3142_v0  ;;  %2652 = vmatpush3.bf16.xpose.msra.mxu0 %v2651_v51  ;;  %v350_v51 = vld [vmem:[%s3149_s27 + $0x660] sm:$0xff] }
  0xde   : > { %2684 = vmatpush3.bf16.xpose.msra.mxu1 %v2683_v52  ;;  %2654 = vmatprep.subr.bf16.mxu0 %v2653_v53  ;;  %v351_v52 = vld [vmem:[%s3149_s27 + $0x668] sm:$0xff]  ;;  %v382_v53 = vld [vmem:[%s3149_s27 + $0x760] sm:$0xff] }
  0xdf   : > { %2686 = vmatprep.subr.bf16.mxu1 %v2685_v54  ;;  %2149 = vmatprep.mubr.f32.mxu0 %v3142_v0  ;;  %v383_v54 = vld [vmem:[%s3149_s27 + $0x768] sm:$0xff]  ;;  %v2675_v59 = vpack.c.bf16 %v351_v52, %v350_v51  ;;  %v441_v52 = vld [vmem:[%s3149_s27 + $0x938] sm:$0xff] }
  0xe0   : > { %2183 = vmatprep.mubr.f32.mxu1 %v3142_v0  ;;  %v361_v0 = vld [vmem:[%s3149_s27 + $0x6b8] sm:$0xff]  ;;  %v2707_v60 = vpack.c.bf16 %v383_v54, %v382_v53  ;;  %v426_v53 = vld [vmem:[%s3149_s27 + $0x8c0] sm:$0xff]  ;;  %v427_v54 = vld [vmem:[%s3149_s27 + $0x8c8] sm:$0xff] }
  0xe1   : > { %v2661_v13 = vpack.c.bf16 %v361_v0, %v360_v8 }
  0xe5   : > { %2656 = vmatpush3.bf16.xpose.msra.mxu0 %v2655_v63  ;;  %v352_v63 = vld [vmem:[%s3149_s27 + $0x670] sm:$0xff] }
  0xe6   : > { %2688 = vmatpush3.bf16.xpose.msra.mxu1 %v2687_v1  ;;  %2658 = vmatprep.subr.bf16.mxu0 %v2657_v2  ;;  %v353_v1 = vld [vmem:[%s3149_s27 + $0x678] sm:$0xff]  ;;  %v384_v2 = vld [vmem:[%s3149_s27 + $0x770] sm:$0xff] }
  0xe7   : > { %2690 = vmatprep.subr.bf16.mxu1 %v2689_v3  ;;  %v385_v3 = vld [vmem:[%s3149_s27 + $0x778] sm:$0xff]  ;;  %v2679_v8 = vpack.c.bf16 %v353_v1, %v352_v63  ;;  %v2761_v63 = vpack.c.bf16 %v459_v58, %v458_v57  ;;  %v410_v1 = vld [vmem:[%s3149_s27 + $0x840] sm:$0xff] }
  0xe8   : > { %v2711_v0 = vpack.c.bf16 %v385_v3, %v384_v2  ;;  %v411_v2 = vld [vmem:[%s3149_s27 + $0x848] sm:$0xff]  ;;  %v442_v3 = vld [vmem:[%s3149_s27 + $0x940] sm:$0xff] }
  0xed   : > { %2660 = vmatpush3.bf16.xpose.msra.mxu0 %v2659_v11  ;;  %v402_v11 = vld [vmem:[%s3149_s27 + $0x800] sm:$0xff] }
  0xee   : > { %2692 = vmatpush3.bf16.xpose.msra.mxu1 %v2691_v12  ;;  %2662 = vmatprep.subr.bf16.mxu0 %v2661_v13  ;;  %v403_v12 = vld [vmem:[%s3149_s27 + $0x808] sm:$0xff]  ;;  %v434_v13 = vld [vmem:[%s3149_s27 + $0x900] sm:$0xff] }
  0xef   : > { %2694 = vmatprep.subr.bf16.mxu1 %v2693_v14  ;;  %v435_v14 = vld [vmem:[%s3149_s27 + $0x908] sm:$0xff]  ;;  %v2715_v19 = vpack.c.bf16 %v403_v12, %v402_v11  ;;  %v412_v12 = vld [vmem:[%s3149_s27 + $0x850] sm:$0xff] }
  0xf0   : > { %v2747_v20 = vpack.c.bf16 %v435_v14, %v434_v13  ;;  %v413_v13 = vld [vmem:[%s3149_s27 + $0x858] sm:$0xff]  ;;  %v444_v14 = vld [vmem:[%s3149_s27 + $0x950] sm:$0xff] }
  0xf5   : > { %2664 = vmatpush3.bf16.xpose.msra.mxu0 %v2663_v23  ;;  %v3434_v23 = vld [vmem:[%s3785_s0] sm:$0xff] }
  0xf6   : > { %2696 = vmatpush3.bf16.xpose.msra.mxu1 %v2695_v24  ;;  %2666 = vmatprep.subr.bf16.mxu0 %v2665_v25  ;;  %v404_v24 = vld [vmem:[%s3149_s27 + $0x810] sm:$0xff]  ;;  %v405_v25 = vld [vmem:[%s3149_s27 + $0x818] sm:$0xff] }
  0xf7   : > { %2698 = vmatprep.subr.bf16.mxu1 %v2697_v26  ;;  %v436_v26 = vld [vmem:[%s3149_s27 + $0x910] sm:$0xff]  ;;  %v2719_v32 = vpack.c.bf16 %v405_v25, %v404_v24  ;;  %v414_v25 = vld [vmem:[%s3149_s27 + $0x860] sm:$0xff] }
  0xf8   : > { %v2751_v33 = vpack.c.bf16 %v437_v27, %v436_v26  ;;  %v415_v26 = vld [vmem:[%s3149_s27 + $0x868] sm:$0xff]  ;;  %v446_v27 = vld [vmem:[%s3149_s27 + $0x960] sm:$0xff] }
  0xfd   : > { %2668 = vmatpush3.bf16.xpose.msra.mxu0 %v2667_v35  ;;  %v2753_v35 = vpack.c.bf16 %v455_v31, %v454_v30  ;;  %v433_v30 = vld [vmem:[%s3149_s27 + $0x8f8] sm:$0xff]  ;;  %v464_v31 = vld [vmem:[%s3149_s27 + $0x9f0] sm:$0xff] }
  0xfe   : > { %2700 = vmatpush3.bf16.xpose.msra.mxu1 %v2699_v36  ;;  %2670 = vmatprep.subr.bf16.mxu0 %v2669_v37  ;;  %v406_v36 = vld [vmem:[%s3149_s27 + $0x820] sm:$0xff]  ;;  %v407_v37 = vld [vmem:[%s3149_s27 + $0x828] sm:$0xff] }
  0xff   : > { %2702 = vmatprep.subr.bf16.mxu1 %v2701_v38  ;;  %v438_v38 = vld [vmem:[%s3149_s27 + $0x920] sm:$0xff]  ;;  %v2723_v44 = vpack.c.bf16 %v407_v37, %v406_v36  ;;  %v416_v37 = vld [vmem:[%s3149_s27 + $0x870] sm:$0xff] }
 0x100   : > { %v2755_v45 = vpack.c.bf16 %v439_v39, %v438_v38  ;;  %v417_v38 = vld [vmem:[%s3149_s27 + $0x878] sm:$0xff]  ;;  %v448_v39 = vld [vmem:[%s3149_s27 + $0x970] sm:$0xff] }
 0x105   : > { %2672 = vmatpush3.bf16.xpose.msra.mxu0 %v2671_v47  ;;  %v2757_v47 = vpack.c.bf16 %v457_v43, %v456_v42  ;;  %v483_v42 = vld [vmem:[%s3149_s27 + $0xa88] sm:$0xff]  ;;  %v514_v43 = vld [vmem:[%s3149_s27 + $0xb80] sm:$0xff] }
 0x106   : > { %2704 = vmatpush3.bf16.xpose.msra.mxu1 %v2703_v48  ;;  %2674 = vmatprep.subr.bf16.mxu0 %v2673_v49  ;;  %v408_v48 = vld [vmem:[%s3149_s27 + $0x830] sm:$0xff]  ;;  %v409_v49 = vld [vmem:[%s3149_s27 + $0x838] sm:$0xff] }
 0x107   : > { %2706 = vmatprep.subr.bf16.mxu1 %v2705_v50  ;;  %v440_v50 = vld [vmem:[%s3149_s27 + $0x930] sm:$0xff] }
 0x10d   : > { %2676 = vmatpush3.bf16.xpose.msra.mxu0 %v2675_v59 }
 0x10e   : > { %2708 = vmatpush3.bf16.xpose.msra.mxu1 %v2707_v60  ;;  %2678 = vmatprep.subr.bf16.mxu0 %v2677_v61  ;;  %v2727_v60 = vpack.c.bf16 %v409_v49, %v408_v48  ;;  %v2759_v61 = vpack.c.bf16 %v441_v52, %v440_v50  ;;  %v466_v49 = vld [vmem:[%s3149_s27 + $0xa00] sm:$0xff]  ;;  %v467_v50 = vld [vmem:[%s3149_s27 + $0xa08] sm:$0xff] }
 0x10f   : > { %2710 = vmatprep.subr.bf16.mxu1 %v2709_v62  ;;  %v2729_v62 = vpack.c.bf16 %v427_v54, %v426_v53  ;;  %v499_v52 = vld [vmem:[%s3149_s27 + $0xb08] sm:$0xff]  ;;  %v484_v53 = vld [vmem:[%s3149_s27 + $0xa90] sm:$0xff]  ;;  %v485_v54 = vld [vmem:[%s3149_s27 + $0xa98] sm:$0xff]  ;;  %v2779_v57 = vpack.c.bf16 %v467_v50, %v466_v49 }
 0x110   : > { %v476_v50 = vld [vmem:[%s3149_s27 + $0xa50] sm:$0xff] }
 0x115   : > { %2680 = vmatpush3.bf16.xpose.msra.mxu0 %v2679_v8  ;;  %v461_v8 = vld [vmem:[%s3149_s27 + $0x9d8] sm:$0xff] }
 0x116   : > { %2712 = vmatpush3.bf16.xpose.msra.mxu1 %v2711_v0  ;;  %2714 = vmatprep.subr.bf16.mxu0 %v2713_v9  ;;  %v2731_v0 = vpack.c.bf16 %v411_v2, %v410_v1  ;;  %v2763_v9 = vpack.c.bf16 %v443_v4, %v442_v3  ;;  %v2765_v11 = vpack.c.bf16 %v461_v8, %v460_v7  ;;  %v501_v1 = vld [vmem:[%s3149_s27 + $0xb18] sm:$0xff]  ;;  %v486_v2 = vld [vmem:[%s3149_s27 + $0xaa0] sm:$0xff]  ;;  %v487_v3 = vld [vmem:[%s3149_s27 + $0xaa8] sm:$0xff] }
 0x117   : > { %2746 = vmatprep.subr.bf16.mxu1 %v2745_v10  ;;  %v2733_v10 = vpack.c.bf16 %v429_v6, %v428_v5  ;;  %v518_v4 = vld [vmem:[%s3149_s27 + $0xba0] sm:$0xff]  ;;  %v519_v5 = vld [vmem:[%s3149_s27 + $0xba8] sm:$0xff]  ;;  %v2785_v8 = vpack.c.bf16 %v487_v3, %v486_v2  ;;  %v496_v3 = vld [vmem:[%s3149_s27 + $0xaf0] sm:$0xff] }
 0x118   : > { %v511_v2 = vld [vmem:[%s3149_s27 + $0xb68] sm:$0xff] }
 0x11c   : > { %2150 = vmatmul.mubr.f32.vlgmr.msra.gmra.mrb[6].mxu0 %v3434_v23 }
 0x11d   : > { %2184 = vmatmul.mubr.f32.vlgmr.msra.gmra.mrb[6].mxu1 %v3434_v23  ;;  %2716 = vmatpush3.bf16.xpose.msra.mxu0 %v2715_v19  ;;  %v463_v19 = vld [vmem:[%s3149_s27 + $0x9e8] sm:$0xff] }
 0x11e   : > { %2748 = vmatpush3.bf16.xpose.msra.mxu1 %v2747_v20  ;;  %2718 = vmatprep.subr.bf16.mxu0 %v2717_v21  ;;  %v2735_v20 = vpack.c.bf16 %v413_v13, %v412_v12  ;;  %v2767_v21 = vpack.c.bf16 %v445_v15, %v444_v14  ;;  %v2769_v24 = vpack.c.bf16 %v463_v19, %v462_v18  ;;  %v503_v12 = vld [vmem:[%s3149_s27 + $0xb28] sm:$0xff]  ;;  %v488_v13 = vld [vmem:[%s3149_s27 + $0xab0] sm:$0xff]  ;;  %v489_v14 = vld [vmem:[%s3149_s27 + $0xab8] sm:$0xff] }
 0x11f   : > { %2750 = vmatprep.subr.bf16.mxu1 %v2749_v22  ;;  %2217 = vmatprep.mubr.f32.mxu0 %v3434_v23  ;;  %v2737_v22 = vpack.c.bf16 %v431_v17, %v430_v16  ;;  %v520_v15 = vld [vmem:[%s3149_s27 + $0xbb0] sm:$0xff]  ;;  %v521_v16 = vld [vmem:[%s3149_s27 + $0xbb8] sm:$0xff]  ;;  %v2789_v19 = vpack.c.bf16 %v489_v14, %v488_v13  ;;  %v546_v14 = vld [vmem:[%s3149_s27 + $0xc80] sm:$0xff] }
 0x120   : > { %2251 = vmatprep.mubr.f32.mxu1 %v3434_v23  ;;  %v513_v13 = vld [vmem:[%s3149_s27 + $0xb78] sm:$0xff] }
 0x125   : > { %2720 = vmatpush3.bf16.xpose.msra.mxu0 %v2719_v32  ;;  %v465_v32 = vld [vmem:[%s3149_s27 + $0x9f8] sm:$0xff] }
 0x126   : > { %2752 = vmatpush3.bf16.xpose.msra.mxu1 %v2751_v33  ;;  %2722 = vmatprep.subr.bf16.mxu0 %v2721_v34  ;;  %v2739_v33 = vpack.c.bf16 %v415_v26, %v414_v25  ;;  %v2771_v34 = vpack.c.bf16 %v447_v28, %v446_v27  ;;  %v2773_v36 = vpack.c.bf16 %v465_v32, %v464_v31  ;;  %v505_v26 = vld [vmem:[%s3149_s27 + $0xb38] sm:$0xff]  ;;  %v490_v27 = vld [vmem:[%s3149_s27 + $0xac0] sm:$0xff]  ;;  %v491_v28 = vld [vmem:[%s3149_s27 + $0xac8] sm:$0xff] }
 0x127   : > { %2754 = vmatprep.subr.bf16.mxu1 %v2753_v35  ;;  %v2741_v35 = vpack.c.bf16 %v433_v30, %v432_v29  ;;  %v522_v31 = vld [vmem:[%s3149_s27 + $0xbc0] sm:$0xff]  ;;  %v523_v32 = vld [vmem:[%s3149_s27 + $0xbc8] sm:$0xff] }
 0x12d   : > { %2724 = vmatpush3.bf16.xpose.msra.mxu0 %v2723_v44  ;;  %v515_v44 = vld [vmem:[%s3149_s27 + $0xb88] sm:$0xff] }
 0x12e   : > { %2756 = vmatpush3.bf16.xpose.msra.mxu1 %v2755_v45  ;;  %2726 = vmatprep.subr.bf16.mxu0 %v2725_v46  ;;  %v2743_v45 = vpack.c.bf16 %v417_v38, %v416_v37  ;;  %v2775_v46 = vpack.c.bf16 %v449_v40, %v448_v39  ;;  %v2809_v48 = vpack.c.bf16 %v515_v44, %v514_v43  ;;  %v474_v38 = vld [vmem:[%s3149_s27 + $0xa40] sm:$0xff]  ;;  %v475_v39 = vld [vmem:[%s3149_s27 + $0xa48] sm:$0xff]  ;;  %v493_v43 = vld [vmem:[%s3149_s27 + $0xad8] sm:$0xff] }
 0x12f   : > { %v724_v51 = vpop.f32.mrb[0].mxu0  ;;  %2758 = vmatprep.subr.bf16.mxu1 %v2757_v47  ;;  %v2777_v47 = vpack.c.bf16 %v483_v42, %v482_v41  ;;  %v2825_v37 = vpack.c.bf16 %v523_v32, %v522_v31  ;;  %v506_v40 = vld [vmem:[%s3149_s27 + $0xb40] sm:$0xff]  ;;  %v507_v41 = vld [vmem:[%s3149_s27 + $0xb48] sm:$0xff]  ;;  %v492_v42 = vld [vmem:[%s3149_s27 + $0xad0] sm:$0xff] }
 0x130   : > { %1794 = vst [vmem:[%s3465_s4] sm:$0xff] %v724_v51  ;;  %v795_v55 = vpop.f32.mrb[0].mxu1  ;;  %v726_v56 = vpop.f32.mrb[1].mxu0  ;;  %v498_v51 = vld [vmem:[%s3149_s27 + $0xb00] sm:$0xff]  ;;  %v524_v44 = vld [vmem:[%s3149_s27 + $0xbd0] sm:$0xff] }
 0x131   : > { %1796 = vst [vmem:[%s3465_s4 + $0x10] sm:$0xff] %v795_v55  ;;  %1795 = vst [vmem:[%s3465_s4 + $0x8] sm:$0xff] %v726_v56  ;;  %v797_v59 = vpop.f32.mrb[1].mxu1  ;;  %v516_v55 = vld [vmem:[%s3149_s27 + $0xb90] sm:$0xff]  ;;  %v517_v56 = vld [vmem:[%s3149_s27 + $0xb98] sm:$0xff]  ;;  %v2811_v58 = vpack.c.bf16 %v499_v52, %v498_v51 }
 0x132   : > { %1797 = vst [vmem:[%s3465_s4 + $0x18] sm:$0xff] %v797_v59  ;;  %v2781_v59 = vpack.c.bf16 %v485_v54, %v484_v53  ;;  %v477_v51 = vld [vmem:[%s3149_s27 + $0xa58] sm:$0xff]  ;;  %v508_v52 = vld [vmem:[%s3149_s27 + $0xb50] sm:$0xff]  ;;  %v494_v54 = vld [vmem:[%s3149_s27 + $0xae0] sm:$0xff] }
 0x133   : > { %v509_v53 = vld [vmem:[%s3149_s27 + $0xb58] sm:$0xff] }
 0x135   : > { %2728 = vmatpush3.bf16.xpose.msra.mxu0 %v2727_v60  ;;  %v2813_v60 = vpack.c.bf16 %v517_v56, %v516_v55  ;;  %v495_v55 = vld [vmem:[%s3149_s27 + $0xae8] sm:$0xff]  ;;  %v526_v56 = vld [vmem:[%s3149_s27 + $0xbe0] sm:$0xff] }
 0x136   : > { %2760 = vmatpush3.bf16.xpose.msra.mxu1 %v2759_v61  ;;  %2730 = vmatprep.subr.bf16.mxu0 %v2729_v62  ;;  %v468_v61 = vld [vmem:[%s3149_s27 + $0xa10] sm:$0xff]  ;;  %v469_v62 = vld [vmem:[%s3149_s27 + $0xa18] sm:$0xff] }
 0x137   : > { %2762 = vmatprep.subr.bf16.mxu1 %v2761_v63  ;;  %v500_v63 = vld [vmem:[%s3149_s27 + $0xb10] sm:$0xff]  ;;  %v2783_v6 = vpack.c.bf16 %v469_v62, %v468_v61  ;;  %v478_v62 = vld [vmem:[%s3149_s27 + $0xa60] sm:$0xff] }
 0x138   : > { %v2815_v7 = vpack.c.bf16 %v501_v1, %v500_v63  ;;  %v479_v63 = vld [vmem:[%s3149_s27 + $0xa68] sm:$0xff]  ;;  %v510_v1 = vld [vmem:[%s3149_s27 + $0xb60] sm:$0xff] }
 0x13d   : > { %2732 = vmatpush3.bf16.xpose.msra.mxu0 %v2731_v0  ;;  %v2817_v0 = vpack.c.bf16 %v519_v5, %v518_v4  ;;  %v497_v4 = vld [vmem:[%s3149_s27 + $0xaf8] sm:$0xff]  ;;  %v528_v5 = vld [vmem:[%s3149_s27 + $0xbf0] sm:$0xff] }
 0x13e   : > { %2764 = vmatpush3.bf16.xpose.msra.mxu1 %v2763_v9  ;;  %2734 = vmatprep.subr.bf16.mxu0 %v2733_v10  ;;  %v470_v9 = vld [vmem:[%s3149_s27 + $0xa20] sm:$0xff]  ;;  %v471_v10 = vld [vmem:[%s3149_s27 + $0xa28] sm:$0xff] }
 0x13f   : > { %2766 = vmatprep.subr.bf16.mxu1 %v2765_v11  ;;  %v502_v11 = vld [vmem:[%s3149_s27 + $0xb20] sm:$0xff]  ;;  %v2787_v17 = vpack.c.bf16 %v471_v10, %v470_v9  ;;  %v480_v10 = vld [vmem:[%s3149_s27 + $0xa70] sm:$0xff] }
 0x140   : > { %v2819_v18 = vpack.c.bf16 %v503_v12, %v502_v11  ;;  %v481_v11 = vld [vmem:[%s3149_s27 + $0xa78] sm:$0xff]  ;;  %v512_v12 = vld [vmem:[%s3149_s27 + $0xb70] sm:$0xff] }
 0x145   : > { %2736 = vmatpush3.bf16.xpose.msra.mxu0 %v2735_v20  ;;  %v2821_v20 = vpack.c.bf16 %v521_v16, %v520_v15  ;;  %v547_v15 = vld [vmem:[%s3149_s27 + $0xc88] sm:$0xff]  ;;  %v578_v16 = vld [vmem:[%s3149_s27 + $0xd80] sm:$0xff] }
 0x146   : > { %2768 = vmatpush3.bf16.xpose.msra.mxu1 %v2767_v21  ;;  %2738 = vmatprep.subr.bf16.mxu0 %v2737_v22  ;;  %v472_v21 = vld [vmem:[%s3149_s27 + $0xa30] sm:$0xff]  ;;  %v473_v22 = vld [vmem:[%s3149_s27 + $0xa38] sm:$0xff] }
 0x147   : > { %2770 = vmatprep.subr.bf16.mxu1 %v2769_v24  ;;  %v504_v24 = vld [vmem:[%s3149_s27 + $0xb30] sm:$0xff] }
 0x14d   : > { %2740 = vmatpush3.bf16.xpose.msra.mxu0 %v2739_v33 }
 0x14e   : > { %2772 = vmatpush3.bf16.xpose.msra.mxu1 %v2771_v34  ;;  %2742 = vmatprep.subr.bf16.mxu0 %v2741_v35  ;;  %v2791_v34 = vpack.c.bf16 %v473_v22, %v472_v21  ;;  %v2823_v35 = vpack.c.bf16 %v505_v26, %v504_v24  ;;  %v530_v22 = vld [vmem:[%s3149_s27 + $0xc00] sm:$0xff]  ;;  %v531_v24 = vld [vmem:[%s3149_s27 + $0xc08] sm:$0xff] }
 0x14f   : > { %2774 = vmatprep.subr.bf16.mxu1 %v2773_v36  ;;  %v2793_v36 = vpack.c.bf16 %v491_v28, %v490_v27  ;;  %v563_v26 = vld [vmem:[%s3149_s27 + $0xd08] sm:$0xff]  ;;  %v548_v27 = vld [vmem:[%s3149_s27 + $0xc90] sm:$0xff]  ;;  %v549_v28 = vld [vmem:[%s3149_s27 + $0xc98] sm:$0xff]  ;;  %v2843_v31 = vpack.c.bf16 %v531_v24, %v530_v22 }
 0x150   : > { %v540_v24 = vld [vmem:[%s3149_s27 + $0xc50] sm:$0xff] }
 0x155   : > { %2744 = vmatpush3.bf16.xpose.msra.mxu0 %v2743_v45  ;;  %v525_v45 = vld [vmem:[%s3149_s27 + $0xbd8] sm:$0xff] }
 0x156   : > { %2776 = vmatpush3.bf16.xpose.msra.mxu1 %v2775_v46  ;;  %2778 = vmatprep.subr.bf16.mxu0 %v2777_v47  ;;  %v2795_v46 = vpack.c.bf16 %v475_v39, %v474_v38  ;;  %v2827_v47 = vpack.c.bf16 %v507_v41, %v506_v40  ;;  %v2829_v49 = vpack.c.bf16 %v525_v45, %v524_v44  ;;  %v565_v38 = vld [vmem:[%s3149_s27 + $0xd18] sm:$0xff]  ;;  %v550_v39 = vld [vmem:[%s3149_s27 + $0xca0] sm:$0xff]  ;;  %v551_v40 = vld [vmem:[%s3149_s27 + $0xca8] sm:$0xff] }
 0x157   : > { %2810 = vmatprep.subr.bf16.mxu1 %v2809_v48  ;;  %v2797_v48 = vpack.c.bf16 %v493_v43, %v492_v42  ;;  %v582_v41 = vld [vmem:[%s3149_s27 + $0xda0] sm:$0xff]  ;;  %v583_v42 = vld [vmem:[%s3149_s27 + $0xda8] sm:$0xff]  ;;  %v2849_v45 = vpack.c.bf16 %v551_v40, %v550_v39  ;;  %v560_v40 = vld [vmem:[%s3149_s27 + $0xcf0] sm:$0xff] }
 0x158   : > { %v575_v39 = vld [vmem:[%s3149_s27 + $0xd68] sm:$0xff] }
 0x15c   : > { %2218 = vmatmul.mubr.f32.vlgmr.msra.gmra.mrb[8].mxu0 %v3434_v23 }
 0x15d   : > { %2252 = vmatmul.mubr.f32.vlgmr.msra.gmra.mrb[8].mxu1 %v3434_v23  ;;  %2780 = vmatpush3.bf16.xpose.msra.mxu0 %v2779_v57  ;;  %v527_v57 = vld [vmem:[%s3149_s27 + $0xbe8] sm:$0xff] }
 0x15e   : > { %2812 = vmatpush3.bf16.xpose.msra.mxu1 %v2811_v58  ;;  %2782 = vmatprep.subr.bf16.mxu0 %v2781_v59  ;;  %v2799_v58 = vpack.c.bf16 %v477_v51, %v476_v50  ;;  %v2831_v59 = vpack.c.bf16 %v509_v53, %v508_v52  ;;  %v2833_v61 = vpack.c.bf16 %v527_v57, %v526_v56  ;;  %v567_v50 = vld [vmem:[%s3149_s27 + $0xd28] sm:$0xff]  ;;  %v552_v51 = vld [vmem:[%s3149_s27 + $0xcb0] sm:$0xff]  ;;  %v553_v52 = vld [vmem:[%s3149_s27 + $0xcb8] sm:$0xff] }
 0x15f   : > { %2814 = vmatprep.subr.bf16.mxu1 %v2813_v60  ;;  %2285 = vmatprep.mubr.f32.mxu0 %v3434_v23  ;;  %v2801_v60 = vpack.c.bf16 %v495_v55, %v494_v54  ;;  %v584_v53 = vld [vmem:[%s3149_s27 + $0xdb0] sm:$0xff]  ;;  %v585_v54 = vld [vmem:[%s3149_s27 + $0xdb8] sm:$0xff]  ;;  %v2853_v57 = vpack.c.bf16 %v553_v52, %v552_v51  ;;  %v610_v52 = vld [vmem:[%s3149_s27 + $0xe80] sm:$0xff] }
 0x160   : > { %2319 = vmatprep.mubr.f32.mxu1 %v3434_v23  ;;  %v577_v51 = vld [vmem:[%s3149_s27 + $0xd78] sm:$0xff] }
 0x165   : > { %2784 = vmatpush3.bf16.xpose.msra.mxu0 %v2783_v6  ;;  %v529_v6 = vld [vmem:[%s3149_s27 + $0xbf8] sm:$0xff] }
 0x166   : > { %2816 = vmatpush3.bf16.xpose.msra.mxu1 %v2815_v7  ;;  %2786 = vmatprep.subr.bf16.mxu0 %v2785_v8  ;;  %v2803_v7 = vpack.c.bf16 %v479_v63, %v478_v62  ;;  %v2835_v8 = vpack.c.bf16 %v511_v2, %v510_v1  ;;  %v2837_v9 = vpack.c.bf16 %v529_v6, %v528_v5  ;;  %v569_v63 = vld [vmem:[%s3149_s27 + $0xd38] sm:$0xff]  ;;  %v554_v1 = vld [vmem:[%s3149_s27 + $0xcc0] sm:$0xff]  ;;  %v555_v2 = vld [vmem:[%s3149_s27 + $0xcc8] sm:$0xff] }
 0x167   : > { %2818 = vmatprep.subr.bf16.mxu1 %v2817_v0  ;;  %v2805_v0 = vpack.c.bf16 %v497_v4, %v496_v3  ;;  %v586_v5 = vld [vmem:[%s3149_s27 + $0xdc0] sm:$0xff]  ;;  %v587_v6 = vld [vmem:[%s3149_s27 + $0xdc8] sm:$0xff] }
 0x16d   : > { %2788 = vmatpush3.bf16.xpose.msra.mxu0 %v2787_v17  ;;  %v579_v17 = vld [vmem:[%s3149_s27 + $0xd88] sm:$0xff] }
 0x16e   : > { %2820 = vmatpush3.bf16.xpose.msra.mxu1 %v2819_v18  ;;  %2790 = vmatprep.subr.bf16.mxu0 %v2789_v19  ;;  %v2807_v18 = vpack.c.bf16 %v481_v11, %v480_v10  ;;  %v2839_v19 = vpack.c.bf16 %v513_v13, %v512_v12  ;;  %v2873_v21 = vpack.c.bf16 %v579_v17, %v578_v16  ;;  %v538_v11 = vld [vmem:[%s3149_s27 + $0xc40] sm:$0xff]  ;;  %v539_v12 = vld [vmem:[%s3149_s27 + $0xc48] sm:$0xff]  ;;  %v557_v16 = vld [vmem:[%s3149_s27 + $0xcd8] sm:$0xff] }
 0x16f   : > { %v866_v25 = vpop.f32.mrb[2].mxu0  ;;  %2822 = vmatprep.subr.bf16.mxu1 %v2821_v20  ;;  %v2841_v20 = vpack.c.bf16 %v547_v15, %v546_v14  ;;  %v2889_v10 = vpack.c.bf16 %v587_v6, %v586_v5  ;;  %v570_v13 = vld [vmem:[%s3149_s27 + $0xd40] sm:$0xff]  ;;  %v571_v14 = vld [vmem:[%s3149_s27 + $0xd48] sm:$0xff]  ;;  %v556_v15 = vld [vmem:[%s3149_s27 + $0xcd0] sm:$0xff] }
 0x170   : > { %1798 = vst [vmem:[%s3465_s4 + $0x20] sm:$0xff] %v866_v25  ;;  %v937_v29 = vpop.f32.mrb[2].mxu1  ;;  %v868_v30 = vpop.f32.mrb[3].mxu0  ;;  %v562_v25 = vld [vmem:[%s3149_s27 + $0xd00] sm:$0xff]  ;;  %v588_v17 = vld [vmem:[%s3149_s27 + $0xdd0] sm:$0xff] }
 0x171   : > { %1800 = vst [vmem:[%s3465_s4 + $0x30] sm:$0xff] %v937_v29  ;;  %1799 = vst [vmem:[%s3465_s4 + $0x28] sm:$0xff] %v868_v30  ;;  %v939_v33 = vpop.f32.mrb[3].mxu1  ;;  %v580_v29 = vld [vmem:[%s3149_s27 + $0xd90] sm:$0xff]  ;;  %v581_v30 = vld [vmem:[%s3149_s27 + $0xd98] sm:$0xff]  ;;  %v2875_v32 = vpack.c.bf16 %v563_v26, %v562_v25 }
 0x172   : > { %1801 = vst [vmem:[%s3465_s4 + $0x38] sm:$0xff] %v939_v33  ;;  %v2845_v33 = vpack.c.bf16 %v549_v28, %v548_v27  ;;  %v541_v25 = vld [vmem:[%s3149_s27 + $0xc58] sm:$0xff]  ;;  %v572_v26 = vld [vmem:[%s3149_s27 + $0xd50] sm:$0xff]  ;;  %v558_v28 = vld [vmem:[%s3149_s27 + $0xce0] sm:$0xff] }
 0x173   : > { %v573_v27 = vld [vmem:[%s3149_s27 + $0xd58] sm:$0xff] }
 0x175   : > { %2792 = vmatpush3.bf16.xpose.msra.mxu0 %v2791_v34  ;;  %v2877_v34 = vpack.c.bf16 %v581_v30, %v580_v29  ;;  %v559_v29 = vld [vmem:[%s3149_s27 + $0xce8] sm:$0xff]  ;;  %v590_v30 = vld [vmem:[%s3149_s27 + $0xde0] sm:$0xff] }
 0x176   : > { %2824 = vmatpush3.bf16.xpose.msra.mxu1 %v2823_v35  ;;  %2794 = vmatprep.subr.bf16.mxu0 %v2793_v36  ;;  %v532_v35 = vld [vmem:[%s3149_s27 + $0xc10] sm:$0xff]  ;;  %v533_v36 = vld [vmem:[%s3149_s27 + $0xc18] sm:$0xff] }
 0x177   : > { %2826 = vmatprep.subr.bf16.mxu1 %v2825_v37  ;;  %v564_v37 = vld [vmem:[%s3149_s27 + $0xd10] sm:$0xff]  ;;  %v2847_v43 = vpack.c.bf16 %v533_v36, %v532_v35  ;;  %v542_v36 = vld [vmem:[%s3149_s27 + $0xc60] sm:$0xff] }
 0x178   : > { %v2879_v44 = vpack.c.bf16 %v565_v38, %v564_v37  ;;  %v543_v37 = vld [vmem:[%s3149_s27 + $0xc68] sm:$0xff]  ;;  %v574_v38 = vld [vmem:[%s3149_s27 + $0xd60] sm:$0xff] }
 0x17d   : > { %2796 = vmatpush3.bf16.xpose.msra.mxu0 %v2795_v46  ;;  %v2881_v46 = vpack.c.bf16 %v583_v42, %v582_v41  ;;  %v561_v41 = vld [vmem:[%s3149_s27 + $0xcf8] sm:$0xff]  ;;  %v592_v42 = vld [vmem:[%s3149_s27 + $0xdf0] sm:$0xff] }
 0x17e   : > { %2828 = vmatpush3.bf16.xpose.msra.mxu1 %v2827_v47  ;;  %2798 = vmatprep.subr.bf16.mxu0 %v2797_v48  ;;  %v534_v47 = vld [vmem:[%s3149_s27 + $0xc20] sm:$0xff]  ;;  %v535_v48 = vld [vmem:[%s3149_s27 + $0xc28] sm:$0xff] }
 0x17f   : > { %2830 = vmatprep.subr.bf16.mxu1 %v2829_v49  ;;  %v566_v49 = vld [vmem:[%s3149_s27 + $0xd20] sm:$0xff]  ;;  %v2851_v55 = vpack.c.bf16 %v535_v48, %v534_v47  ;;  %v544_v48 = vld [vmem:[%s3149_s27 + $0xc70] sm:$0xff] }
 0x180   : > { %v2883_v56 = vpack.c.bf16 %v567_v50, %v566_v49  ;;  %v545_v49 = vld [vmem:[%s3149_s27 + $0xc78] sm:$0xff]  ;;  %v576_v50 = vld [vmem:[%s3149_s27 + $0xd70] sm:$0xff] }
 0x185   : > { %2800 = vmatpush3.bf16.xpose.msra.mxu0 %v2799_v58  ;;  %v2885_v58 = vpack.c.bf16 %v585_v54, %v584_v53  ;;  %v611_v53 = vld [vmem:[%s3149_s27 + $0xe88] sm:$0xff]  ;;  %v642_v54 = vld [vmem:[%s3149_s27 + $0xf80] sm:$0xff] }
 0x186   : > { %2832 = vmatpush3.bf16.xpose.msra.mxu1 %v2831_v59  ;;  %2802 = vmatprep.subr.bf16.mxu0 %v2801_v60  ;;  %v536_v59 = vld [vmem:[%s3149_s27 + $0xc30] sm:$0xff]  ;;  %v537_v60 = vld [vmem:[%s3149_s27 + $0xc38] sm:$0xff] }
 0x187   : > { %2834 = vmatprep.subr.bf16.mxu1 %v2833_v61  ;;  %v568_v61 = vld [vmem:[%s3149_s27 + $0xd30] sm:$0xff] }
 0x18d   : > { %2804 = vmatpush3.bf16.xpose.msra.mxu0 %v2803_v7 }
 0x18e   : > { %2836 = vmatpush3.bf16.xpose.msra.mxu1 %v2835_v8  ;;  %2806 = vmatprep.subr.bf16.mxu0 %v2805_v0  ;;  %v2855_v8 = vpack.c.bf16 %v537_v60, %v536_v59  ;;  %v2887_v0 = vpack.c.bf16 %v569_v63, %v568_v61  ;;  %v594_v60 = vld [vmem:[%s3149_s27 + $0xe00] sm:$0xff]  ;;  %v595_v61 = vld [vmem:[%s3149_s27 + $0xe08] sm:$0xff] }
 0x18f   : > { %2838 = vmatprep.subr.bf16.mxu1 %v2837_v9  ;;  %v2857_v9 = vpack.c.bf16 %v555_v2, %v554_v1  ;;  %v627_v63 = vld [vmem:[%s3149_s27 + $0xf08] sm:$0xff]  ;;  %v612_v1 = vld [vmem:[%s3149_s27 + $0xe90] sm:$0xff]  ;;  %v613_v2 = vld [vmem:[%s3149_s27 + $0xe98] sm:$0xff]  ;;  %v2907_v5 = vpack.c.bf16 %v595_v61, %v594_v60 }
 0x190   : > { %v604_v60 = vld [vmem:[%s3149_s27 + $0xe50] sm:$0xff]  ;;  %v605_v61 = vld [vmem:[%s3149_s27 + $0xe58] sm:$0xff] }
 0x195   : > { %2808 = vmatpush3.bf16.xpose.msra.mxu0 %v2807_v18  ;;  %v589_v18 = vld [vmem:[%s3149_s27 + $0xdd8] sm:$0xff] }
 0x196   : > { %2840 = vmatpush3.bf16.xpose.msra.mxu1 %v2839_v19  ;;  %2842 = vmatprep.subr.bf16.mxu0 %v2841_v20  ;;  %v2859_v19 = vpack.c.bf16 %v539_v12, %v538_v11  ;;  %v2891_v20 = vpack.c.bf16 %v571_v14, %v570_v13  ;;  %v2893_v22 = vpack.c.bf16 %v589_v18, %v588_v17  ;;  %v629_v11 = vld [vmem:[%s3149_s27 + $0xf18] sm:$0xff]  ;;  %v614_v12 = vld [vmem:[%s3149_s27 + $0xea0] sm:$0xff]  ;;  %v615_v13 = vld [vmem:[%s3149_s27 + $0xea8] sm:$0xff] }
 0x197   : > { %2874 = vmatprep.subr.bf16.mxu1 %v2873_v21  ;;  %v2861_v21 = vpack.c.bf16 %v557_v16, %v556_v15  ;;  %v646_v14 = vld [vmem:[%s3149_s27 + $0xfa0] sm:$0xff]  ;;  %v647_v15 = vld [vmem:[%s3149_s27 + $0xfa8] sm:$0xff]  ;;  %v2913_v18 = vpack.c.bf16 %v615_v13, %v614_v12  ;;  %v624_v12 = vld [vmem:[%s3149_s27 + $0xef0] sm:$0xff] }
 0x198   : > { %v625_v13 = vld [vmem:[%s3149_s27 + $0xef8] sm:$0xff] }
 0x19c   : > { %2286 = vmatmul.mubr.f32.vlgmr.msra.gmra.mrb[10].mxu0 %v3434_v23 }
 0x19d   : > { %2320 = vmatmul.mubr.f32.vlgmr.msra.gmra.mrb[10].mxu1 %v3434_v23  ;;  %2844 = vmatpush3.bf16.xpose.msra.mxu0 %v2843_v31  ;;  %v591_v31 = vld [vmem:[%s3149_s27 + $0xde8] sm:$0xff] }
 0x19e   : > { %2876 = vmatpush3.bf16.xpose.msra.mxu1 %v2875_v32  ;;  %2846 = vmatprep.subr.bf16.mxu0 %v2845_v33  ;;  %v2863_v32 = vpack.c.bf16 %v541_v25, %v540_v24  ;;  %v2895_v33 = vpack.c.bf16 %v573_v27, %v572_v26  ;;  %v2897_v35 = vpack.c.bf16 %v591_v31, %v590_v30  ;;  %v631_v24 = vld [vmem:[%s3149_s27 + $0xf28] sm:$0xff]  ;;  %v616_v25 = vld [vmem:[%s3149_s27 + $0xeb0] sm:$0xff]  ;;  %v617_v26 = vld [vmem:[%s3149_s27 + $0xeb8] sm:$0xff] }
 0x19f   : > { %2878 = vmatprep.subr.bf16.mxu1 %v2877_v34  ;;  %2353 = vmatprep.mubr.f32.mxu0 %v3434_v23  ;;  %v2865_v34 = vpack.c.bf16 %v559_v29, %v558_v28  ;;  %v649_v27 = vld [vmem:[%s3149_s27 + $0xfb8] sm:$0xff]  ;;  %v2917_v30 = vpack.c.bf16 %v617_v26, %v616_v25 }
 0x1a0   : > { %2387 = vmatprep.mubr.f32.mxu1 %v3434_v23 }
 0x1a5   : > { %2848 = vmatpush3.bf16.xpose.msra.mxu0 %v2847_v43  ;;  %v593_v43 = vld [vmem:[%s3149_s27 + $0xdf8] sm:$0xff] }
 0x1a6   : > { %2880 = vmatpush3.bf16.xpose.msra.mxu1 %v2879_v44  ;;  %2850 = vmatprep.subr.bf16.mxu0 %v2849_v45  ;;  %v2867_v44 = vpack.c.bf16 %v543_v37, %v542_v36  ;;  %v2899_v45 = vpack.c.bf16 %v575_v39, %v574_v38  ;;  %v2901_v47 = vpack.c.bf16 %v593_v43, %v592_v42  ;;  %v633_v36 = vld [vmem:[%s3149_s27 + $0xf38] sm:$0xff]  ;;  %v618_v37 = vld [vmem:[%s3149_s27 + $0xec0] sm:$0xff]  ;;  %v619_v38 = vld [vmem:[%s3149_s27 + $0xec8] sm:$0xff] }
 0x1a7   : > { %2882 = vmatprep.subr.bf16.mxu1 %v2881_v46  ;;  %v2869_v46 = vpack.c.bf16 %v561_v41, %v560_v40  ;;  %v650_v41 = vld [vmem:[%s3149_s27 + $0xfc0] sm:$0xff]  ;;  %v651_v42 = vld [vmem:[%s3149_s27 + $0xfc8] sm:$0xff] }
 0x1ad   : > { %2852 = vmatpush3.bf16.xpose.msra.mxu0 %v2851_v55  ;;  %v643_v55 = vld [vmem:[%s3149_s27 + $0xf88] sm:$0xff] }
 0x1ae   : > { %2884 = vmatpush3.bf16.xpose.msra.mxu1 %v2883_v56  ;;  %2854 = vmatprep.subr.bf16.mxu0 %v2853_v57  ;;  %v2871_v56 = vpack.c.bf16 %v545_v49, %v544_v48  ;;  %v2903_v57 = vpack.c.bf16 %v577_v51, %v576_v50  ;;  %v2937_v59 = vpack.c.bf16 %v643_v55, %v642_v54  ;;  %v602_v48 = vld [vmem:[%s3149_s27 + $0xe40] sm:$0xff]  ;;  %v603_v49 = vld [vmem:[%s3149_s27 + $0xe48] sm:$0xff]  ;;  %v652_v54 = vld [vmem:[%s3149_s27 + $0xfd0] sm:$0xff] }
 0x1af   : > { %v1008_v62 = vpop.f32.mrb[4].mxu0  ;;  %2886 = vmatprep.subr.bf16.mxu1 %v2885_v58  ;;  %v2905_v58 = vpack.c.bf16 %v611_v53, %v610_v52  ;;  %v634_v50 = vld [vmem:[%s3149_s27 + $0xf40] sm:$0xff]  ;;  %v635_v51 = vld [vmem:[%s3149_s27 + $0xf48] sm:$0xff]  ;;  %v620_v52 = vld [vmem:[%s3149_s27 + $0xed0] sm:$0xff] }
 0x1b0   : > { %1802 = vst [vmem:[%s3465_s4 + $0x40] sm:$0xff] %v1008_v62  ;;  %v1079_v3 = vpop.f32.mrb[4].mxu1  ;;  %v1010_v4 = vpop.f32.mrb[5].mxu0  ;;  %v626_v62 = vld [vmem:[%s3149_s27 + $0xf00] sm:$0xff]  ;;  %v621_v53 = vld [vmem:[%s3149_s27 + $0xed8] sm:$0xff] }
 0x1b1   : > { %1804 = vst [vmem:[%s3465_s4 + $0x50] sm:$0xff] %v1079_v3  ;;  %1803 = vst [vmem:[%s3465_s4 + $0x48] sm:$0xff] %v1010_v4  ;;  %v1081_v7 = vpop.f32.mrb[5].mxu1  ;;  %v644_v3 = vld [vmem:[%s3149_s27 + $0xf90] sm:$0xff]  ;;  %v645_v4 = vld [vmem:[%s3149_s27 + $0xf98] sm:$0xff]  ;;  %v2939_v6 = vpack.c.bf16 %v627_v63, %v626_v62 }
 0x1b2   : > { %1805 = vst [vmem:[%s3465_s4 + $0x58] sm:$0xff] %v1081_v7  ;;  %v2909_v7 = vpack.c.bf16 %v613_v2, %v612_v1  ;;  %v653_v55 = vld [vmem:[%s3149_s27 + $0xfd8] sm:$0xff]  ;;  %v636_v62 = vld [vmem:[%s3149_s27 + $0xf50] sm:$0xff]  ;;  %v622_v1 = vld [vmem:[%s3149_s27 + $0xee0] sm:$0xff] }
 0x1b3   : > { %v637_v63 = vld [vmem:[%s3149_s27 + $0xf58] sm:$0xff]  ;;  %v623_v2 = vld [vmem:[%s3149_s27 + $0xee8] sm:$0xff] }
 0x1b5   : > { %2856 = vmatpush3.bf16.xpose.msra.mxu0 %v2855_v8  ;;  %v2941_v8 = vpack.c.bf16 %v645_v4, %v644_v3  ;;  %v654_v3 = vld [vmem:[%s3149_s27 + $0xfe0] sm:$0xff]  ;;  %v655_v4 = vld [vmem:[%s3149_s27 + $0xfe8] sm:$0xff] }
 0x1b6   : > { %2888 = vmatpush3.bf16.xpose.msra.mxu1 %v2887_v0  ;;  %2858 = vmatprep.subr.bf16.mxu0 %v2857_v9  ;;  %v596_v0 = vld [vmem:[%s3149_s27 + $0xe10] sm:$0xff]  ;;  %v597_v9 = vld [vmem:[%s3149_s27 + $0xe18] sm:$0xff] }
 0x1b7   : > { %2890 = vmatprep.subr.bf16.mxu1 %v2889_v10  ;;  %v628_v10 = vld [vmem:[%s3149_s27 + $0xf10] sm:$0xff]  ;;  %v2911_v16 = vpack.c.bf16 %v597_v9, %v596_v0  ;;  %v606_v0 = vld [vmem:[%s3149_s27 + $0xe60] sm:$0xff]  ;;  %v607_v9 = vld [vmem:[%s3149_s27 + $0xe68] sm:$0xff] }
 0x1b8   : > { %v2943_v17 = vpack.c.bf16 %v629_v11, %v628_v10  ;;  %v638_v10 = vld [vmem:[%s3149_s27 + $0xf60] sm:$0xff]  ;;  %v639_v11 = vld [vmem:[%s3149_s27 + $0xf68] sm:$0xff] }
 0x1bd   : > { %2860 = vmatpush3.bf16.xpose.msra.mxu0 %v2859_v19  ;;  %v2945_v19 = vpack.c.bf16 %v647_v15, %v646_v14  ;;  %v656_v14 = vld [vmem:[%s3149_s27 + $0xff0] sm:$0xff]  ;;  %v657_v15 = vld [vmem:[%s3149_s27 + $0xff8] sm:$0xff] }
 0x1be   : > { %2892 = vmatpush3.bf16.xpose.msra.mxu1 %v2891_v20  ;;  %2862 = vmatprep.subr.bf16.mxu0 %v2861_v21  ;;  %v598_v20 = vld [vmem:[%s3149_s27 + $0xe20] sm:$0xff]  ;;  %v599_v21 = vld [vmem:[%s3149_s27 + $0xe28] sm:$0xff] }
 0x1bf   : > { %2894 = vmatprep.subr.bf16.mxu1 %v2893_v22  ;;  %v630_v22 = vld [vmem:[%s3149_s27 + $0xf20] sm:$0xff]  ;;  %v2915_v28 = vpack.c.bf16 %v599_v21, %v598_v20  ;;  %v608_v20 = vld [vmem:[%s3149_s27 + $0xe70] sm:$0xff]  ;;  %v609_v21 = vld [vmem:[%s3149_s27 + $0xe78] sm:$0xff] }
 0x1c0   : > { %v2947_v29 = vpack.c.bf16 %v631_v24, %v630_v22  ;;  %v640_v22 = vld [vmem:[%s3149_s27 + $0xf70] sm:$0xff]  ;;  %v641_v24 = vld [vmem:[%s3149_s27 + $0xf78] sm:$0xff]  ;;  %v2935_v25 = vpack.c.bf16 %v609_v21, %v608_v20 }
 0x1c1   : > { %v2967_v26 = vpack.c.bf16 %v641_v24, %v640_v22 }
 0x1c5   : > { %2864 = vmatpush3.bf16.xpose.msra.mxu0 %v2863_v32  ;;  %v600_v32 = vld [vmem:[%s3149_s27 + $0xe30] sm:$0xff] }
 0x1c6   : > { %2896 = vmatpush3.bf16.xpose.msra.mxu1 %v2895_v33  ;;  %2866 = vmatprep.subr.bf16.mxu0 %v2865_v34  ;;  %v601_v33 = vld [vmem:[%s3149_s27 + $0xe38] sm:$0xff]  ;;  %v632_v34 = vld [vmem:[%s3149_s27 + $0xf30] sm:$0xff] }
 0x1c7   : > { %2898 = vmatprep.subr.bf16.mxu1 %v2897_v35 }
 0x1cd   : > { %2868 = vmatpush3.bf16.xpose.msra.mxu0 %v2867_v44  ;;  %v2919_v44 = vpack.c.bf16 %v601_v33, %v600_v32 }
 0x1ce   : > { %2900 = vmatpush3.bf16.xpose.msra.mxu1 %v2899_v45  ;;  %2870 = vmatprep.subr.bf16.mxu0 %v2869_v46  ;;  %v2951_v45 = vpack.c.bf16 %v633_v36, %v632_v34  ;;  %v2921_v46 = vpack.c.bf16 %v619_v38, %v618_v37 }
 0x1cf   : > { %2902 = vmatprep.subr.bf16.mxu1 %v2901_v47  ;;  %v2953_v47 = vpack.c.bf16 %v651_v42, %v650_v41 }
 0x1d5   : > { %2872 = vmatpush3.bf16.xpose.msra.mxu0 %v2871_v56  ;;  %v2923_v56 = vpack.c.bf16 %v603_v49, %v602_v48 }
 0x1d6   : > { %2904 = vmatpush3.bf16.xpose.msra.mxu1 %v2903_v57  ;;  %2906 = vmatprep.subr.bf16.mxu0 %v2905_v58  ;;  %v2955_v57 = vpack.c.bf16 %v635_v51, %v634_v50  ;;  %v2925_v58 = vpack.c.bf16 %v621_v53, %v620_v52 }
 0x1d7   : > { %2938 = vmatprep.subr.bf16.mxu1 %v2937_v59  ;;  %v2957_v59 = vpack.c.bf16 %v653_v55, %v652_v54 }
 0x1dc   : > { %2354 = vmatmul.mubr.f32.vlgmr.msra.gmra.mrb[12].mxu0 %v3434_v23 }
 0x1dd   : > { %2388 = vmatmul.mubr.f32.vlgmr.msra.gmra.mrb[12].mxu1 %v3434_v23  ;;  %2908 = vmatpush3.bf16.xpose.msra.mxu0 %v2907_v5  ;;  %v2927_v5 = vpack.c.bf16 %v605_v61, %v604_v60 }
 0x1de   : > { %2940 = vmatpush3.bf16.xpose.msra.mxu1 %v2939_v6  ;;  %2910 = vmatprep.subr.bf16.mxu0 %v2909_v7  ;;  %v2959_v6 = vpack.c.bf16 %v637_v63, %v636_v62  ;;  %v2929_v7 = vpack.c.bf16 %v623_v2, %v622_v1 }
 0x1df   : > { %2942 = vmatprep.subr.bf16.mxu1 %v2941_v8  ;;  %2421 = vmatprep.mubr.f32.mxu0 %v3434_v23  ;;  %v2961_v8 = vpack.c.bf16 %v655_v4, %v654_v3 }
 0x1e0   : > { %2455 = vmatprep.mubr.f32.mxu1 %v3434_v23  ;;  %v648_v23 = vld [vmem:[%s3149_s27 + $0xfb0] sm:$0xff] }
 0x1e1   : > { %v2949_v31 = vpack.c.bf16 %v649_v27, %v648_v23  ;;  %v3009_v23 = vld [vmem:[%s3785_s0] sm:$0xff] }
 0x1e5   : > { %2912 = vmatpush3.bf16.xpose.msra.mxu0 %v2911_v16  ;;  %v2931_v16 = vpack.c.bf16 %v607_v9, %v606_v0 }
 0x1e6   : > { %2944 = vmatpush3.bf16.xpose.msra.mxu1 %v2943_v17  ;;  %2914 = vmatprep.subr.bf16.mxu0 %v2913_v18  ;;  %v2963_v17 = vpack.c.bf16 %v639_v11, %v638_v10  ;;  %v2933_v18 = vpack.c.bf16 %v625_v13, %v624_v12 }
 0x1e7   : > { %2946 = vmatprep.subr.bf16.mxu1 %v2945_v19  ;;  %v2965_v19 = vpack.c.bf16 %v657_v15, %v656_v14 }
 0x1ed   : > { %2916 = vmatpush3.bf16.xpose.msra.mxu0 %v2915_v28 }
 0x1ee   : > { %2948 = vmatpush3.bf16.xpose.msra.mxu1 %v2947_v29  ;;  %2918 = vmatprep.subr.bf16.mxu0 %v2917_v30 }
 0x1ef   : > { %v1150_v35 = vpop.f32.mrb[6].mxu0  ;;  %2950 = vmatprep.subr.bf16.mxu1 %v2949_v31 }
 0x1f0   : > { %1806 = vst [vmem:[%s3465_s4 + $0x60] sm:$0xff] %v1150_v35  ;;  %v1221_v39 = vpop.f32.mrb[6].mxu1  ;;  %v1152_v40 = vpop.f32.mrb[7].mxu0 }
 0x1f1   : > { %1808 = vst [vmem:[%s3465_s4 + $0x70] sm:$0xff] %v1221_v39  ;;  %1807 = vst [vmem:[%s3465_s4 + $0x68] sm:$0xff] %v1152_v40  ;;  %v1223_v43 = vpop.f32.mrb[7].mxu1 }
 0x1f2   : > { %1809 = vst [vmem:[%s3465_s4 + $0x78] sm:$0xff] %v1223_v43 }
 0x1f5   : > { %2920 = vmatpush3.bf16.xpose.msra.mxu0 %v2919_v44 }
 0x1f6   : > { %2952 = vmatpush3.bf16.xpose.msra.mxu1 %v2951_v45  ;;  %2922 = vmatprep.subr.bf16.mxu0 %v2921_v46 }
 0x1f7   : > { %2954 = vmatprep.subr.bf16.mxu1 %v2953_v47 }
 0x1fd   : > { %2924 = vmatpush3.bf16.xpose.msra.mxu0 %v2923_v56 }
 0x1fe   : > { %2956 = vmatpush3.bf16.xpose.msra.mxu1 %v2955_v57  ;;  %2926 = vmatprep.subr.bf16.mxu0 %v2925_v58 }
 0x1ff   : > { %2958 = vmatprep.subr.bf16.mxu1 %v2957_v59 }
 0x205   : > { %2928 = vmatpush3.bf16.xpose.msra.mxu0 %v2927_v5 }
 0x206   : > { %2960 = vmatpush3.bf16.xpose.msra.mxu1 %v2959_v6  ;;  %2930 = vmatprep.subr.bf16.mxu0 %v2929_v7 }
 0x207   : > { %2962 = vmatprep.subr.bf16.mxu1 %v2961_v8 }
 0x20d   : > { %2932 = vmatpush3.bf16.xpose.msra.mxu0 %v2931_v16 }
 0x20e   : > { %2964 = vmatpush3.bf16.xpose.msra.mxu1 %v2963_v17  ;;  %2934 = vmatprep.subr.bf16.mxu0 %v2933_v18 }
 0x20f   : > { %2966 = vmatprep.subr.bf16.mxu1 %v2965_v19 }
 0x215   : > { %2936 = vmatpush3.bf16.xpose.msra.mxu0 %v2935_v25 }
 0x216   : > { %2968 = vmatpush3.bf16.xpose.msra.mxu1 %v2967_v26 }
 0x21c   : > { %2422 = vmatmul.mubr.f32.vlgmr.msra.gmra.mrb[14].mxu0 %v3009_v23 }
 0x21d   : > { %2456 = vmatmul.mubr.f32.vlgmr.msra.gmra.mrb[14].mxu1 %v3009_v23 }
 0x22f   : > { %v1292_v27 = vpop.f32.mrb[8].mxu0 }
 0x230   : > { %1810 = vst [vmem:[%s3465_s4 + $0x80] sm:$0xff] %v1292_v27  ;;  %v1363_v28 = vpop.f32.mrb[8].mxu1  ;;  %v1294_v29 = vpop.f32.mrb[9].mxu0 }
 0x231   : > { %1812 = vst [vmem:[%s3465_s4 + $0x90] sm:$0xff] %v1363_v28  ;;  %1811 = vst [vmem:[%s3465_s4 + $0x88] sm:$0xff] %v1294_v29  ;;  %v1365_v30 = vpop.f32.mrb[9].mxu1 }
 0x232   : > { %1813 = vst [vmem:[%s3465_s4 + $0x98] sm:$0xff] %v1365_v30 }
 0x26f   : > { %v1434_v31 = vpop.f32.mrb[10].mxu0 }
 0x270   : > { %1814 = vst [vmem:[%s3465_s4 + $0xa0] sm:$0xff] %v1434_v31  ;;  %v1505_v32 = vpop.f32.mrb[10].mxu1  ;;  %v1436_v33 = vpop.f32.mrb[11].mxu0 }
 0x271   : > { %1816 = vst [vmem:[%s3465_s4 + $0xb0] sm:$0xff] %v1505_v32  ;;  %1815 = vst [vmem:[%s3465_s4 + $0xa8] sm:$0xff] %v1436_v33  ;;  %v1507_v34 = vpop.f32.mrb[11].mxu1 }
 0x272   : > { %1817 = vst [vmem:[%s3465_s4 + $0xb8] sm:$0xff] %v1507_v34 }
 0x2af   : > { %v1576_v35 = vpop.f32.mrb[12].mxu0 }
 0x2b0   : > { %1818 = vst [vmem:[%s3465_s4 + $0xc0] sm:$0xff] %v1576_v35  ;;  %v1647_v36 = vpop.f32.mrb[12].mxu1  ;;  %v1578_v37 = vpop.f32.mrb[13].mxu0 }
 0x2b1   : > { %1820 = vst [vmem:[%s3465_s4 + $0xd0] sm:$0xff] %v1647_v36  ;;  %1819 = vst [vmem:[%s3465_s4 + $0xc8] sm:$0xff] %v1578_v37  ;;  %v1649_v38 = vpop.f32.mrb[13].mxu1 }
 0x2b2   : > { %1821 = vst [vmem:[%s3465_s4 + $0xd8] sm:$0xff] %v1649_v38 }
 0x2ef   : > { %v1718_v39 = vpop.f32.mrb[14].mxu0 }
 0x2f0   : > { %1822 = vst [vmem:[%s3465_s4 + $0xe0] sm:$0xff] %v1718_v39  ;;  %v1789_v40 = vpop.f32.mrb[14].mxu1  ;;  %v1720_v41 = vpop.f32.mrb[15].mxu0 }
 0x2f1   : > { %1824 = vst [vmem:[%s3465_s4 + $0xf0] sm:$0xff] %v1789_v40  ;;  %1823 = vst [vmem:[%s3465_s4 + $0xe8] sm:$0xff] %v1720_v41  ;;  %v1791_v42 = vpop.f32.mrb[15].mxu1 }
 0x2f2   : > { %1825 = vst [vmem:[%s3465_s4 + $0xf8] sm:$0xff] %v1791_v42 }
 0x2f3   : > { %3023 = shalt.err (!%p3020_p3)
}
 0x2f4   : > { %s3024_s25 = scalar_lea.hbm %s3738_s17, 4096  ;;  %s3028_s28 = scalar_lea.hbm %s3787_s2, 8192 }
 0x2f5   : > { %p3025_p4 = scmp.ne.s32.totalorder %s3738_s17, %s3024_s25  ;;  %p3029_p9 = scmp.lt.u32.totalorder %s3738_s17, %s3787_s2 }
 0x2f6   : > { %p3030_p10 = scmp.lt.u32.totalorder %s3028_s28, %s3024_s25  ;;  %p3032_p12 = scmp.lt.u32.totalorder %s3024_s25, %s3738_s17 }
 0x2f7   : > { %p3026_p7 = pnand %p3025_p4, %p3128_p5 }
 0x2f8   : > { %p3031_p11 = por %p3030_p10, %p3029_p9 }
 0x2f9   : > { %p3027_p8 = pneg %p3026_p7 }
 0x2fa   : > { %p3033_p13 = por %p3032_p12, %p3031_p11 }
 0x2fc   : > { %p3034_p0 = pnand %p3033_p13, %p3027_p8 }
 0x2fe   : > { %3037 = shalt.err (!%p3034_p0)
}
 0x2ff   : > { %2969 = dma.vmem_to_hbm [thread:$0]  (%p3128_p5), %s3740_s8, 4096, %s3738_s17, %s1827_s13  }
 0x300 PF: > { %p2975_p1 = scmp.ge.s32.totalorder %s3072_s12, 2  ;;  %s1853_s3 = sand.u32 1, %s3060_s9  }
 0x301   : > { %s1854_s4 = scalar_lea.sflag [#allocation3], %s1853_s3 }
 0x302   : > { %p2972_p2 = pnand %p2975_p1, %p3132_p6 }
 0x304   : > { %3055 = dma.done.wait (!%p2972_p2), %s1854_s4, 4096  }
 0x305   : > { %3057 = vsyncadd (!%p2972_p2), %s1854_s4, 4294963200  ;;  %p12_p3 = scmp.ge.s32.totalorder %s3115_s15, 4   ;;  %s3790_s9 = smov %s3064_s10 }
 0x306   : > { %s3791_s10 = smov %s3068_s11  ;;  %s3792_s11 = smov %s3126_s18 }
 0x307   : > { %s3793_s12 = smov %s3115_s15  ;;  %14 = sbr.rel (!%p12_p3) target bundleno = 3 (0x3), region = 63 }
 0x30e   :  { %1859 = vsyncpa [#allocation3], 1 }
 0x30f   :  { %1861 = vsyncpa [#allocation3 + $0x1], 1 }

</bundles_post_ra>
